<compile_context>
chip_gen: v7x
topology: tpu7x:2x2x1
jax: 0.10.0
libtpu: 0.0.40
codegen_flags: <defaults>
</compile_context>

<pallas_src>
import jax
import jax.numpy as jnp
from jax.experimental import pallas as pl
from jax.experimental.pallas import tpu as pltpu


def _make_disc_kernel(Bt):
    """Fused kernel: Bt images per grid step, all intermediates in VMEM."""
    M = Bt * 8  # packed (image, col-slot) rows per conv stage

    def kernel(p_ref, w1_ref, b1_ref, w2_ref, b2_ref, w3_ref, b3_ref,
               o_ref, a1s_ref, a2_ref):
        f32 = jnp.float32

        # Zero-fill the conv1 activation scratch: pad slots must be finite
        # (they are read by the "garbage" conv2 rows, which are later masked).
        a1s_ref[...] = jnp.zeros(a1s_ref.shape, a1s_ref.dtype)

        # ---------------- conv1 ----------------
        # One (5*M, 256) x (256, 64) matmul per output-parity chunk t=(u,v).
        # LHS rows are ordered (row-pair i, image b, col-pair j).
        w1 = w1_ref[...]                       # (256, 64) bf16
        b1 = b1_ref[...]                       # (1, 64)  f32
        for t in range(4):
            lhs = p_ref[t, 0]                  # (5*M, 256) bf16
            h = jnp.dot(lhs, w1, preferred_element_type=f32) + b1
            h = jnp.maximum(h, 0.2 * h).astype(jnp.bfloat16)
            for i in range(5):                 # conv1 output row-pair index
                a1s_ref[i, 0:M, 64 * t:64 * (t + 1)] = h[i * M:(i + 1) * M]

        # ---------------- conv2 ----------------
        # a1s layout: a1s[i, b*8 + j, 64*(2u+v) + c] = conv1[b, 2i+u, 2j+v, c]
        # One (M, 1024) x (1024, 128) matmul per conv2 output row.
        w2 = w2_ref[...]                       # (1024, 128) bf16
        b2 = b2_ref[...]                       # (1, 128)   f32
        for oh in range(4):
            pieces = []
            for p in range(2):
                for q in range(2):
                    pieces.append(a1s_ref[oh + p, q:q + M, :])   # (M, 256)
            patch = jnp.concatenate(pieces, axis=-1)             # (M, 1024)
            h2 = jnp.dot(patch, w2, preferred_element_type=f32) + b2
            a2_ref[oh] = jnp.maximum(h2, 0.2 * h2)               # (M, 128) f32

        # ---------------- conv3 + sigmoid ----------------
        # Single output channel: masked multiply + reduce (no N=1 matmul).
        acc = None
        for oh in range(4):
            term = a2_ref[oh].reshape(Bt, 8, 128) * w3_ref[oh]   # (Bt,8,128)
            acc = term if acc is None else acc + term
        s = jnp.sum(acc, axis=2, keepdims=True)                  # (Bt, 8, 1)
        s = jnp.sum(s, axis=1, keepdims=True)                    # (Bt, 1, 1)
        val = s + b3_ref[...]                                    # + (1, 1)
        z = jnp.exp(-jnp.abs(val))                               # stable sigmoid
        sig = jnp.where(val >= 0.0, 1.0 / (1.0 + z), z / (1.0 + z))
        o_ref[...] = sig.astype(o_ref.dtype)

    return kernel


def _disc_pallas(P, w1m, b1r, w2m, b2r, w3p, b3r, *, Bt, G):
    M = Bt * 8
    kernel = _make_disc_kernel(Bt)

    flops = G * (2 * 4 * (5 * M) * 256 * 64 + 2 * 4 * M * 1024 * 128
                 + 2 * 4 * M * 128)
    bytes_accessed = (P.size * 2 + w1m.size * 2 + w2m.size * 2 + w3p.size * 4
                      + (64 + 128 + 1) * 4 + G * Bt * 4)
    cost = pl.CostEstimate(flops=flops, transcendentals=G * Bt,
                           bytes_accessed=bytes_accessed)

    grid_spec = pltpu.PrefetchScalarGridSpec(
        num_scalar_prefetch=0,
        grid=(G,),
        in_specs=[
            pl.BlockSpec((4, 1, 5 * M, 256), lambda g: (0, g, 0, 0)),  # patches
            pl.BlockSpec((256, 64), lambda g: (0, 0)),                 # w1
            pl.BlockSpec((1, 64), lambda g: (0, 0)),                   # b1
            pl.BlockSpec((1024, 128), lambda g: (0, 0)),               # w2
            pl.BlockSpec((1, 128), lambda g: (0, 0)),                  # b2
            pl.BlockSpec((4, 8, 128), lambda g: (0, 0, 0)),            # w3 (padded)
            pl.BlockSpec((1, 1), lambda g: (0, 0)),                    # b3
        ],
        out_specs=pl.BlockSpec((Bt, 1, 1), lambda g: (g, 0, 0)),
        scratch_shapes=[
            pltpu.VMEM((5, M + 8, 256), jnp.bfloat16),   # conv1 activations
            pltpu.VMEM((4, M, 128), jnp.float32),        # conv2 activations
        ],
    )
    return pl.pallas_call(
        kernel,
        out_shape=jax.ShapeDtypeStruct((G * Bt, 1, 1), jnp.float32),
        grid_spec=grid_spec,
        compiler_params=pltpu.CompilerParams(dimension_semantics=("parallel",)),
        cost_estimate=cost,
    )(P, w1m, b1r, w2m, b2r, w3p, b3r)


def discriminator_forward(params, x_nchw):
    w1, b1 = params["conv1"]
    w2, b2 = params["conv2"]
    w3, b3 = params["conv3"]
    B, C, H, W = x_nchw.shape
    # Geometry of the conditional-GAN discriminator head (MNIST + 10 label maps).
    assert C == 11 and H == 28 and W == 28, "kernel is specialised to 11x28x28"

    # ---- batch blocking --------------------------------------------------
    if B >= 8:
        Bt = 8                                   # images per grid step
    else:
        Bt = ((B + 1) // 2) * 2                  # even => Bt*8 is bf16-tile aligned
    B_pad = ((B + Bt - 1) // Bt) * Bt
    G = B_pad // Bt

    # ---- wrapper-side layout prep (cheap XLA ops, all in bf16) -----------
    CP = 16                                       # pad input channels 11 -> 16
    x = jnp.transpose(x_nchw, (0, 2, 3, 1)).astype(jnp.bfloat16)           # NHWC
    x = jnp.pad(x, ((0, B_pad - B), (0, 0), (0, 0), (0, CP - C)))
    # space-to-depth 2x2: (B_pad, 14, 14, 64), channel order (a, e, cin)
    y = x.reshape(B_pad, 14, 2, 14, 2, CP).transpose(0, 1, 3, 2, 4, 5)
    y = y.reshape(B_pad, 14, 14, 4 * CP)

    # conv1 im2col split by conv1-output row/col parity (u, v).  Only the
    # 10x10 conv1 output block that feeds the final 1x1 output is built.
    chunks = []
    for u in (0, 1):
        for v in (0, 1):
            pieces = []
            for p in (0, 1):
                for q in (0, 1):
                    pieces.append(y[:, u + p:u + p + 9:2,
                                    v + q:v + q + 9:2, :])   # (B_pad, 5, 5, 64)
            patch = jnp.concatenate(pieces, axis=-1)          # (B_pad, 5, 5, 256)
            patch = jnp.pad(patch, ((0, 0), (0, 0), (0, 3), (0, 0)))  # j: 5 -> 8 slots
            chunks.append(patch)
    P = jnp.stack(chunks, axis=0)                             # (4, B_pad, 5, 8, 256)
    P = P.reshape(4, G, Bt, 5, 8, 256).transpose(0, 1, 3, 2, 4, 5)
    P = P.reshape(4, G, 5 * Bt * 8, 256)                      # rows ordered (i, b, j)

    # conv1 weights: (oc,ic,kh,kw) -> (p,q,a,e,cin,oc) -> (256,64); kh=2p+a, kw=2q+e
    w1p = jnp.pad(w1, ((0, 0), (0, CP - C), (0, 0), (0, 0)))
    w1m = jnp.transpose(w1p.reshape(64, CP, 2, 2, 2, 2),
                        (2, 4, 3, 5, 1, 0)).reshape(256, 64).astype(jnp.bfloat16)
    # conv2 weights: (oc,ic,kh,kw) -> (p,q,u,v,ic,oc) -> (1024,128); kh=2p+u, kw=2q+v
    w2m = jnp.transpose(w2.reshape(128, 64, 2, 2, 2, 2),
                        (2, 4, 3, 5, 1, 0)).reshape(1024, 128).astype(jnp.bfloat16)
    # conv3 weights: (1,128,4,4) -> (kh, kw, ic), zero-padded to the 8 packed col slots
    w3m = jnp.transpose(w3[0], (1, 2, 0)).astype(jnp.float32)               # (4, 4, 128)
    w3p = jnp.pad(w3m, ((0, 0), (0, 4), (0, 0)))                            # (4, 8, 128)

    b1r = b1.reshape(1, 64).astype(jnp.float32)
    b2r = b2.reshape(1, 128).astype(jnp.float32)
    b3r = b3.reshape(1, 1).astype(jnp.float32)

    out = _disc_pallas(P, w1m, b1r, w2m, b2r, w3p, b3r, Bt=Bt, G=G)
    return out[:B].reshape(B, 1, 1, 1)


def init_params(key):
    """Deterministic PyTorch-default-style init (uniform +/- 1/sqrt(fan_in))."""
    def conv_init(k, oc, ic, kh, kw):
        kw_, kb_ = jax.random.split(k)
        bound = 1.0 / float(jnp.sqrt(float(ic * kh * kw)))
        w = jax.random.uniform(kw_, (oc, ic, kh, kw), jnp.float32, -bound, bound)
        b = jax.random.uniform(kb_, (oc,), jnp.float32, -bound, bound)
        return w, b

    k1, k2, k3 = jax.random.split(key, 3)
    return {
        "conv1": conv_init(k1, 64, 11, 4, 4),
        "conv2": conv_init(k2, 128, 64, 4, 4),
        "conv3": conv_init(k3, 1, 128, 4, 4),
    }


def _reference_forward(params, x_nchw):
    """Pure-XLA f32 reference (loose numerical sanity check)."""
    def conv(x, wb):
        w, b = wb
        y = jax.lax.conv_general_dilated(
            x, w, window_strides=(2, 2), padding="VALID",
            dimension_numbers=("NCHW", "OIHW", "NCHW"))
        return y + b.reshape(1, -1, 1, 1)

    x = x_nchw.astype(jnp.float32)
    x = conv(x, params["conv1"]); x = jnp.where(x >= 0, x, 0.2 * x)
    x = conv(x, params["conv2"]); x = jnp.where(x >= 0, x, 0.2 * x)
    x = conv(x, params["conv3"])
    return jax.nn.sigmoid(x)


if __name__ == "__main__":
    key = jax.random.PRNGKey(0)
    pkey, xkey = jax.random.split(key)
    params = init_params(pkey)

    # conditional-GAN discriminator input: 1 image channel + 10 one-hot label
    # channels = 11 channels over 28x28 (MNIST-style), batch = 2
    x = jax.random.normal(xkey, (2, 11, 28, 28), jnp.float32)
    fwd = jax.jit(discriminator_forward)
    out = jax.block_until_ready(fwd(params, x))
    assert out.shape == (2, 1, 1, 1), out.shape
    assert bool(jnp.all((out >= 0.0) & (out <= 1.0)))
    ref = _reference_forward(params, x)
    assert bool(jnp.all(jnp.abs(out - ref) < 5e-2)), (out, ref)

    # second shape: exercises batch padding and a multi-step "parallel" grid
    x2 = jax.random.normal(jax.random.PRNGKey(1), (10, 11, 28, 28), jnp.float32)
    out2 = jax.block_until_ready(jax.jit(discriminator_forward)(params, x2))
    assert out2.shape == (10, 1, 1, 1), out2.shape
    ref2 = _reference_forward(params, x2)
    assert bool(jnp.all(jnp.abs(out2 - ref2) < 5e-2)), (out2, ref2)

    print("KERNEL_OK")
</pallas_src>

<mosaic_0001>
module attributes {stable_mosaic.version = 11 : i64} {
  func.func @kernel(%arg0: i32, %arg1: memref<4x1x80x256xbf16, #tpu.memory_space<vmem>>, %arg2: memref<256x64xbf16, #tpu.memory_space<vmem>>, %arg3: memref<1x64xf32, #tpu.memory_space<vmem>>, %arg4: memref<1024x128xbf16, #tpu.memory_space<vmem>>, %arg5: memref<1x128xf32, #tpu.memory_space<vmem>>, %arg6: memref<4x8x128xf32, #tpu.memory_space<vmem>>, %arg7: memref<1x1xf32, #tpu.memory_space<vmem>>, %arg8: memref<2x1x1xf32, #tpu.memory_space<vmem>>, %arg9: memref<5x24x256xbf16, #tpu.memory_space<vmem>>, %arg10: memref<4x16x128xf32, #tpu.memory_space<vmem>>) attributes {dimension_semantics = [#tpu.dimension_semantics<parallel>], iteration_bounds = array<i64: 1>, scalar_prefetch = 0 : i64, scratch_operands = 2 : i64, tpu.core_type = #tpu.core_type<tc>, window_params = [{transform_indices = @transform_0, window_bounds = array<i64: 4, 1, 80, 256>}, {pipeline_mode = #tpu.pipeline_mode<synchronous>, transform_indices = @transform_1, window_bounds = array<i64: 256, 64>}, {pipeline_mode = #tpu.pipeline_mode<synchronous>, transform_indices = @transform_2, window_bounds = array<i64: 1, 64>}, {pipeline_mode = #tpu.pipeline_mode<synchronous>, transform_indices = @transform_3, window_bounds = array<i64: 1024, 128>}, {pipeline_mode = #tpu.pipeline_mode<synchronous>, transform_indices = @transform_4, window_bounds = array<i64: 1, 128>}, {pipeline_mode = #tpu.pipeline_mode<synchronous>, transform_indices = @transform_5, window_bounds = array<i64: 4, 8, 128>}, {pipeline_mode = #tpu.pipeline_mode<synchronous>, transform_indices = @transform_6, window_bounds = array<i64: 1, 1>}, {transform_indices = @transform_7, window_bounds = array<i64: 2, 1, 1>}]} {
    %cst = arith.constant 0.000000e+00 : bf16
    %0 = vector.broadcast %cst : bf16 to vector<5x24x256xbf16>
    %c0 = arith.constant 0 : index
    %c0_0 = arith.constant 0 : index
    %c0_1 = arith.constant 0 : index
    %1 = vector.load %arg9[%c0, %c0_0, %c0_1] : memref<5x24x256xbf16, #tpu.memory_space<vmem>>, vector<5x24x256xbf16>
    tpu.vector_store %arg9[%c0, %c0_0, %c0_1], %0 {strides = array<i32>} : memref<5x24x256xbf16, #tpu.memory_space<vmem>>, vector<5x24x256xbf16>,
    %c0_2 = arith.constant 0 : index
    %c0_3 = arith.constant 0 : index
    %2 = vector.load %arg2[%c0_2, %c0_3] : memref<256x64xbf16, #tpu.memory_space<vmem>>, vector<256x64xbf16>
    %c0_4 = arith.constant 0 : index
    %c0_5 = arith.constant 0 : index
    %3 = vector.load %arg3[%c0_4, %c0_5] : memref<1x64xf32, #tpu.memory_space<vmem>>, vector<1x64xf32>
    %c0_6 = arith.constant 0 : index
    %c0_7 = arith.constant 0 : index
    %c0_8 = arith.constant 0 : index
    %c0_9 = arith.constant 0 : index
    %4 = vector.load %arg1[%c0_6, %c0_7, %c0_8, %c0_9] : memref<4x1x80x256xbf16, #tpu.memory_space<vmem>>, vector<1x1x80x256xbf16>
    %5 = vector.shape_cast %4 : vector<1x1x80x256xbf16> to vector<80x256xbf16>
    %cst_10 = arith.constant dense<0.000000e+00> : vector<80x64xf32>
    %6 = tpu.matmul %5, %2, %cst_10 {dimension_numbers = #tpu.dot_dimension_numbers<[1], [0], [0], [1], [0, 0, 1, 1], [], []>} : vector<80x256xbf16>, vector<256x64xbf16>, vector<80x64xf32> -> vector<80x64xf32>
    %7 = vector.broadcast %3 : vector<1x64xf32> to vector<80x64xf32>
    %8 = arith.addf %6, %7 : vector<80x64xf32>
    %cst_11 = arith.constant 2.000000e-01 : f32
    %9 = vector.broadcast %cst_11 : f32 to vector<80x64xf32>
    %10 = arith.mulf %9, %8 : vector<80x64xf32>
    %11 = arith.maximumf %8, %10 : vector<80x64xf32>
    %12 = arith.truncf %11 : vector<80x64xf32> to vector<80x64xbf16>
    %13 = vector.extract_strided_slice %12 {offsets = [0, 0], sizes = [16, 64], strides = [1, 1]} : vector<80x64xbf16> to vector<16x64xbf16>
    %c0_12 = arith.constant 0 : index
    %c0_13 = arith.constant 0 : index
    %c0_14 = arith.constant 0 : index
    %14 = vector.load %arg9[%c0_12, %c0_13, %c0_14] : memref<5x24x256xbf16, #tpu.memory_space<vmem>>, vector<1x16x64xbf16>
    %15 = vector.shape_cast %14 : vector<1x16x64xbf16> to vector<16x64xbf16>
    %16 = vector.shape_cast %13 : vector<16x64xbf16> to vector<1x16x64xbf16>
    tpu.vector_store %arg9[%c0_12, %c0_13, %c0_14], %16 {strides = array<i32>} : memref<5x24x256xbf16, #tpu.memory_space<vmem>>, vector<1x16x64xbf16>,
    %17 = vector.extract_strided_slice %12 {offsets = [16, 0], sizes = [16, 64], strides = [1, 1]} : vector<80x64xbf16> to vector<16x64xbf16>
    %c1 = arith.constant 1 : index
    %c0_15 = arith.constant 0 : index
    %c0_16 = arith.constant 0 : index
    %18 = vector.load %arg9[%c1, %c0_15, %c0_16] : memref<5x24x256xbf16, #tpu.memory_space<vmem>>, vector<1x16x64xbf16>
    %19 = vector.shape_cast %18 : vector<1x16x64xbf16> to vector<16x64xbf16>
    %20 = vector.shape_cast %17 : vector<16x64xbf16> to vector<1x16x64xbf16>
    tpu.vector_store %arg9[%c1, %c0_15, %c0_16], %20 {strides = array<i32>} : memref<5x24x256xbf16, #tpu.memory_space<vmem>>, vector<1x16x64xbf16>,
    %21 = vector.extract_strided_slice %12 {offsets = [32, 0], sizes = [16, 64], strides = [1, 1]} : vector<80x64xbf16> to vector<16x64xbf16>
    %c2 = arith.constant 2 : index
    %c0_17 = arith.constant 0 : index
    %c0_18 = arith.constant 0 : index
    %22 = vector.load %arg9[%c2, %c0_17, %c0_18] : memref<5x24x256xbf16, #tpu.memory_space<vmem>>, vector<1x16x64xbf16>
    %23 = vector.shape_cast %22 : vector<1x16x64xbf16> to vector<16x64xbf16>
    %24 = vector.shape_cast %21 : vector<16x64xbf16> to vector<1x16x64xbf16>
    tpu.vector_store %arg9[%c2, %c0_17, %c0_18], %24 {strides = array<i32>} : memref<5x24x256xbf16, #tpu.memory_space<vmem>>, vector<1x16x64xbf16>,
    %25 = vector.extract_strided_slice %12 {offsets = [48, 0], sizes = [16, 64], strides = [1, 1]} : vector<80x64xbf16> to vector<16x64xbf16>
    %c3 = arith.constant 3 : index
    %c0_19 = arith.constant 0 : index
    %c0_20 = arith.constant 0 : index
    %26 = vector.load %arg9[%c3, %c0_19, %c0_20] : memref<5x24x256xbf16, #tpu.memory_space<vmem>>, vector<1x16x64xbf16>
    %27 = vector.shape_cast %26 : vector<1x16x64xbf16> to vector<16x64xbf16>
    %28 = vector.shape_cast %25 : vector<16x64xbf16> to vector<1x16x64xbf16>
    tpu.vector_store %arg9[%c3, %c0_19, %c0_20], %28 {strides = array<i32>} : memref<5x24x256xbf16, #tpu.memory_space<vmem>>, vector<1x16x64xbf16>,
    %29 = vector.extract_strided_slice %12 {offsets = [64, 0], sizes = [16, 64], strides = [1, 1]} : vector<80x64xbf16> to vector<16x64xbf16>
    %c4 = arith.constant 4 : index
    %c0_21 = arith.constant 0 : index
    %c0_22 = arith.constant 0 : index
    %30 = vector.load %arg9[%c4, %c0_21, %c0_22] : memref<5x24x256xbf16, #tpu.memory_space<vmem>>, vector<1x16x64xbf16>
    %31 = vector.shape_cast %30 : vector<1x16x64xbf16> to vector<16x64xbf16>
    %32 = vector.shape_cast %29 : vector<16x64xbf16> to vector<1x16x64xbf16>
    tpu.vector_store %arg9[%c4, %c0_21, %c0_22], %32 {strides = array<i32>} : memref<5x24x256xbf16, #tpu.memory_space<vmem>>, vector<1x16x64xbf16>,
    %c1_23 = arith.constant 1 : index
    %c0_24 = arith.constant 0 : index
    %c0_25 = arith.constant 0 : index
    %c0_26 = arith.constant 0 : index
    %33 = vector.load %arg1[%c1_23, %c0_24, %c0_25, %c0_26] : memref<4x1x80x256xbf16, #tpu.memory_space<vmem>>, vector<1x1x80x256xbf16>
    %34 = vector.shape_cast %33 : vector<1x1x80x256xbf16> to vector<80x256xbf16>
    %cst_27 = arith.constant dense<0.000000e+00> : vector<80x64xf32>
    %35 = tpu.matmul %34, %2, %cst_27 {dimension_numbers = #tpu.dot_dimension_numbers<[1], [0], [0], [1], [0, 0, 1, 1], [], []>} : vector<80x256xbf16>, vector<256x64xbf16>, vector<80x64xf32> -> vector<80x64xf32>
    %36 = vector.broadcast %3 : vector<1x64xf32> to vector<80x64xf32>
    %37 = arith.addf %35, %36 : vector<80x64xf32>
    %cst_28 = arith.constant 2.000000e-01 : f32
    %38 = vector.broadcast %cst_28 : f32 to vector<80x64xf32>
    %39 = arith.mulf %38, %37 : vector<80x64xf32>
    %40 = arith.maximumf %37, %39 : vector<80x64xf32>
    %41 = arith.truncf %40 : vector<80x64xf32> to vector<80x64xbf16>
    %42 = vector.extract_strided_slice %41 {offsets = [0, 0], sizes = [16, 64], strides = [1, 1]} : vector<80x64xbf16> to vector<16x64xbf16>
    %c0_29 = arith.constant 0 : index
    %c0_30 = arith.constant 0 : index
    %c64 = arith.constant 64 : index
    %43 = vector.load %arg9[%c0_29, %c0_30, %c64] : memref<5x24x256xbf16, #tpu.memory_space<vmem>>, vector<1x16x64xbf16>
    %44 = vector.shape_cast %43 : vector<1x16x64xbf16> to vector<16x64xbf16>
    %45 = vector.shape_cast %42 : vector<16x64xbf16> to vector<1x16x64xbf16>
    tpu.vector_store %arg9[%c0_29, %c0_30, %c64], %45 {strides = array<i32>} : memref<5x24x256xbf16, #tpu.memory_space<vmem>>, vector<1x16x64xbf16>,
    %46 = vector.extract_strided_slice %41 {offsets = [16, 0], sizes = [16, 64], strides = [1, 1]} : vector<80x64xbf16> to vector<16x64xbf16>
    %c1_31 = arith.constant 1 : index
    %c0_32 = arith.constant 0 : index
    %c64_33 = arith.constant 64 : index
    %47 = vector.load %arg9[%c1_31, %c0_32, %c64_33] : memref<5x24x256xbf16, #tpu.memory_space<vmem>>, vector<1x16x64xbf16>
    %48 = vector.shape_cast %47 : vector<1x16x64xbf16> to vector<16x64xbf16>
    %49 = vector.shape_cast %46 : vector<16x64xbf16> to vector<1x16x64xbf16>
    tpu.vector_store %arg9[%c1_31, %c0_32, %c64_33], %49 {strides = array<i32>} : memref<5x24x256xbf16, #tpu.memory_space<vmem>>, vector<1x16x64xbf16>,
    %50 = vector.extract_strided_slice %41 {offsets = [32, 0], sizes = [16, 64], strides = [1, 1]} : vector<80x64xbf16> to vector<16x64xbf16>
    %c2_34 = arith.constant 2 : index
    %c0_35 = arith.constant 0 : index
    %c64_36 = arith.constant 64 : index
    %51 = vector.load %arg9[%c2_34, %c0_35, %c64_36] : memref<5x24x256xbf16, #tpu.memory_space<vmem>>, vector<1x16x64xbf16>
    %52 = vector.shape_cast %51 : vector<1x16x64xbf16> to vector<16x64xbf16>
    %53 = vector.shape_cast %50 : vector<16x64xbf16> to vector<1x16x64xbf16>
    tpu.vector_store %arg9[%c2_34, %c0_35, %c64_36], %53 {strides = array<i32>} : memref<5x24x256xbf16, #tpu.memory_space<vmem>>, vector<1x16x64xbf16>,
    %54 = vector.extract_strided_slice %41 {offsets = [48, 0], sizes = [16, 64], strides = [1, 1]} : vector<80x64xbf16> to vector<16x64xbf16>
    %c3_37 = arith.constant 3 : index
    %c0_38 = arith.constant 0 : index
    %c64_39 = arith.constant 64 : index
    %55 = vector.load %arg9[%c3_37, %c0_38, %c64_39] : memref<5x24x256xbf16, #tpu.memory_space<vmem>>, vector<1x16x64xbf16>
    %56 = vector.shape_cast %55 : vector<1x16x64xbf16> to vector<16x64xbf16>
    %57 = vector.shape_cast %54 : vector<16x64xbf16> to vector<1x16x64xbf16>
    tpu.vector_store %arg9[%c3_37, %c0_38, %c64_39], %57 {strides = array<i32>} : memref<5x24x256xbf16, #tpu.memory_space<vmem>>, vector<1x16x64xbf16>,
    %58 = vector.extract_strided_slice %41 {offsets = [64, 0], sizes = [16, 64], strides = [1, 1]} : vector<80x64xbf16> to vector<16x64xbf16>
    %c4_40 = arith.constant 4 : index
    %c0_41 = arith.constant 0 : index
    %c64_42 = arith.constant 64 : index
    %59 = vector.load %arg9[%c4_40, %c0_41, %c64_42] : memref<5x24x256xbf16, #tpu.memory_space<vmem>>, vector<1x16x64xbf16>
    %60 = vector.shape_cast %59 : vector<1x16x64xbf16> to vector<16x64xbf16>
    %61 = vector.shape_cast %58 : vector<16x64xbf16> to vector<1x16x64xbf16>
    tpu.vector_store %arg9[%c4_40, %c0_41, %c64_42], %61 {strides = array<i32>} : memref<5x24x256xbf16, #tpu.memory_space<vmem>>, vector<1x16x64xbf16>,
    %c2_43 = arith.constant 2 : index
    %c0_44 = arith.constant 0 : index
    %c0_45 = arith.constant 0 : index
    %c0_46 = arith.constant 0 : index
    %62 = vector.load %arg1[%c2_43, %c0_44, %c0_45, %c0_46] : memref<4x1x80x256xbf16, #tpu.memory_space<vmem>>, vector<1x1x80x256xbf16>
    %63 = vector.shape_cast %62 : vector<1x1x80x256xbf16> to vector<80x256xbf16>
    %cst_47 = arith.constant dense<0.000000e+00> : vector<80x64xf32>
    %64 = tpu.matmul %63, %2, %cst_47 {dimension_numbers = #tpu.dot_dimension_numbers<[1], [0], [0], [1], [0, 0, 1, 1], [], []>} : vector<80x256xbf16>, vector<256x64xbf16>, vector<80x64xf32> -> vector<80x64xf32>
    %65 = vector.broadcast %3 : vector<1x64xf32> to vector<80x64xf32>
    %66 = arith.addf %64, %65 : vector<80x64xf32>
    %cst_48 = arith.constant 2.000000e-01 : f32
    %67 = vector.broadcast %cst_48 : f32 to vector<80x64xf32>
    %68 = arith.mulf %67, %66 : vector<80x64xf32>
    %69 = arith.maximumf %66, %68 : vector<80x64xf32>
    %70 = arith.truncf %69 : vector<80x64xf32> to vector<80x64xbf16>
    %71 = vector.extract_strided_slice %70 {offsets = [0, 0], sizes = [16, 64], strides = [1, 1]} : vector<80x64xbf16> to vector<16x64xbf16>
    %c0_49 = arith.constant 0 : index
    %c0_50 = arith.constant 0 : index
    %c128 = arith.constant 128 : index
    %72 = vector.load %arg9[%c0_49, %c0_50, %c128] : memref<5x24x256xbf16, #tpu.memory_space<vmem>>, vector<1x16x64xbf16>
    %73 = vector.shape_cast %72 : vector<1x16x64xbf16> to vector<16x64xbf16>
    %74 = vector.shape_cast %71 : vector<16x64xbf16> to vector<1x16x64xbf16>
    tpu.vector_store %arg9[%c0_49, %c0_50, %c128], %74 {strides = array<i32>} : memref<5x24x256xbf16, #tpu.memory_space<vmem>>, vector<1x16x64xbf16>,
    %75 = vector.extract_strided_slice %70 {offsets = [16, 0], sizes = [16, 64], strides = [1, 1]} : vector<80x64xbf16> to vector<16x64xbf16>
    %c1_51 = arith.constant 1 : index
    %c0_52 = arith.constant 0 : index
    %c128_53 = arith.constant 128 : index
    %76 = vector.load %arg9[%c1_51, %c0_52, %c128_53] : memref<5x24x256xbf16, #tpu.memory_space<vmem>>, vector<1x16x64xbf16>
    %77 = vector.shape_cast %76 : vector<1x16x64xbf16> to vector<16x64xbf16>
    %78 = vector.shape_cast %75 : vector<16x64xbf16> to vector<1x16x64xbf16>
    tpu.vector_store %arg9[%c1_51, %c0_52, %c128_53], %78 {strides = array<i32>} : memref<5x24x256xbf16, #tpu.memory_space<vmem>>, vector<1x16x64xbf16>,
    %79 = vector.extract_strided_slice %70 {offsets = [32, 0], sizes = [16, 64], strides = [1, 1]} : vector<80x64xbf16> to vector<16x64xbf16>
    %c2_54 = arith.constant 2 : index
    %c0_55 = arith.constant 0 : index
    %c128_56 = arith.constant 128 : index
    %80 = vector.load %arg9[%c2_54, %c0_55, %c128_56] : memref<5x24x256xbf16, #tpu.memory_space<vmem>>, vector<1x16x64xbf16>
    %81 = vector.shape_cast %80 : vector<1x16x64xbf16> to vector<16x64xbf16>
    %82 = vector.shape_cast %79 : vector<16x64xbf16> to vector<1x16x64xbf16>
    tpu.vector_store %arg9[%c2_54, %c0_55, %c128_56], %82 {strides = array<i32>} : memref<5x24x256xbf16, #tpu.memory_space<vmem>>, vector<1x16x64xbf16>,
    %83 = vector.extract_strided_slice %70 {offsets = [48, 0], sizes = [16, 64], strides = [1, 1]} : vector<80x64xbf16> to vector<16x64xbf16>
    %c3_57 = arith.constant 3 : index
    %c0_58 = arith.constant 0 : index
    %c128_59 = arith.constant 128 : index
    %84 = vector.load %arg9[%c3_57, %c0_58, %c128_59] : memref<5x24x256xbf16, #tpu.memory_space<vmem>>, vector<1x16x64xbf16>
    %85 = vector.shape_cast %84 : vector<1x16x64xbf16> to vector<16x64xbf16>
    %86 = vector.shape_cast %83 : vector<16x64xbf16> to vector<1x16x64xbf16>
    tpu.vector_store %arg9[%c3_57, %c0_58, %c128_59], %86 {strides = array<i32>} : memref<5x24x256xbf16, #tpu.memory_space<vmem>>, vector<1x16x64xbf16>,
    %87 = vector.extract_strided_slice %70 {offsets = [64, 0], sizes = [16, 64], strides = [1, 1]} : vector<80x64xbf16> to vector<16x64xbf16>
    %c4_60 = arith.constant 4 : index
    %c0_61 = arith.constant 0 : index
    %c128_62 = arith.constant 128 : index
    %88 = vector.load %arg9[%c4_60, %c0_61, %c128_62] : memref<5x24x256xbf16, #tpu.memory_space<vmem>>, vector<1x16x64xbf16>
    %89 = vector.shape_cast %88 : vector<1x16x64xbf16> to vector<16x64xbf16>
    %90 = vector.shape_cast %87 : vector<16x64xbf16> to vector<1x16x64xbf16>
    tpu.vector_store %arg9[%c4_60, %c0_61, %c128_62], %90 {strides = array<i32>} : memref<5x24x256xbf16, #tpu.memory_space<vmem>>, vector<1x16x64xbf16>,
    %c3_63 = arith.constant 3 : index
    %c0_64 = arith.constant 0 : index
    %c0_65 = arith.constant 0 : index
    %c0_66 = arith.constant 0 : index
    %91 = vector.load %arg1[%c3_63, %c0_64, %c0_65, %c0_66] : memref<4x1x80x256xbf16, #tpu.memory_space<vmem>>, vector<1x1x80x256xbf16>
    %92 = vector.shape_cast %91 : vector<1x1x80x256xbf16> to vector<80x256xbf16>
    %cst_67 = arith.constant dense<0.000000e+00> : vector<80x64xf32>
    %93 = tpu.matmul %92, %2, %cst_67 {dimension_numbers = #tpu.dot_dimension_numbers<[1], [0], [0], [1], [0, 0, 1, 1], [], []>} : vector<80x256xbf16>, vector<256x64xbf16>, vector<80x64xf32> -> vector<80x64xf32>
    %94 = vector.broadcast %3 : vector<1x64xf32> to vector<80x64xf32>
    %95 = arith.addf %93, %94 : vector<80x64xf32>
    %cst_68 = arith.constant 2.000000e-01 : f32
    %96 = vector.broadcast %cst_68 : f32 to vector<80x64xf32>
    %97 = arith.mulf %96, %95 : vector<80x64xf32>
    %98 = arith.maximumf %95, %97 : vector<80x64xf32>
    %99 = arith.truncf %98 : vector<80x64xf32> to vector<80x64xbf16>
    %100 = vector.extract_strided_slice %99 {offsets = [0, 0], sizes = [16, 64], strides = [1, 1]} : vector<80x64xbf16> to vector<16x64xbf16>
    %c0_69 = arith.constant 0 : index
    %c0_70 = arith.constant 0 : index
    %c192 = arith.constant 192 : index
    %101 = vector.load %arg9[%c0_69, %c0_70, %c192] : memref<5x24x256xbf16, #tpu.memory_space<vmem>>, vector<1x16x64xbf16>
    %102 = vector.shape_cast %101 : vector<1x16x64xbf16> to vector<16x64xbf16>
    %103 = vector.shape_cast %100 : vector<16x64xbf16> to vector<1x16x64xbf16>
    tpu.vector_store %arg9[%c0_69, %c0_70, %c192], %103 {strides = array<i32>} : memref<5x24x256xbf16, #tpu.memory_space<vmem>>, vector<1x16x64xbf16>,
    %104 = vector.extract_strided_slice %99 {offsets = [16, 0], sizes = [16, 64], strides = [1, 1]} : vector<80x64xbf16> to vector<16x64xbf16>
    %c1_71 = arith.constant 1 : index
    %c0_72 = arith.constant 0 : index
    %c192_73 = arith.constant 192 : index
    %105 = vector.load %arg9[%c1_71, %c0_72, %c192_73] : memref<5x24x256xbf16, #tpu.memory_space<vmem>>, vector<1x16x64xbf16>
    %106 = vector.shape_cast %105 : vector<1x16x64xbf16> to vector<16x64xbf16>
    %107 = vector.shape_cast %104 : vector<16x64xbf16> to vector<1x16x64xbf16>
    tpu.vector_store %arg9[%c1_71, %c0_72, %c192_73], %107 {strides = array<i32>} : memref<5x24x256xbf16, #tpu.memory_space<vmem>>, vector<1x16x64xbf16>,
    %108 = vector.extract_strided_slice %99 {offsets = [32, 0], sizes = [16, 64], strides = [1, 1]} : vector<80x64xbf16> to vector<16x64xbf16>
    %c2_74 = arith.constant 2 : index
    %c0_75 = arith.constant 0 : index
    %c192_76 = arith.constant 192 : index
    %109 = vector.load %arg9[%c2_74, %c0_75, %c192_76] : memref<5x24x256xbf16, #tpu.memory_space<vmem>>, vector<1x16x64xbf16>
    %110 = vector.shape_cast %109 : vector<1x16x64xbf16> to vector<16x64xbf16>
    %111 = vector.shape_cast %108 : vector<16x64xbf16> to vector<1x16x64xbf16>
    tpu.vector_store %arg9[%c2_74, %c0_75, %c192_76], %111 {strides = array<i32>} : memref<5x24x256xbf16, #tpu.memory_space<vmem>>, vector<1x16x64xbf16>,
    %112 = vector.extract_strided_slice %99 {offsets = [48, 0], sizes = [16, 64], strides = [1, 1]} : vector<80x64xbf16> to vector<16x64xbf16>
    %c3_77 = arith.constant 3 : index
    %c0_78 = arith.constant 0 : index
    %c192_79 = arith.constant 192 : index
    %113 = vector.load %arg9[%c3_77, %c0_78, %c192_79] : memref<5x24x256xbf16, #tpu.memory_space<vmem>>, vector<1x16x64xbf16>
    %114 = vector.shape_cast %113 : vector<1x16x64xbf16> to vector<16x64xbf16>
    %115 = vector.shape_cast %112 : vector<16x64xbf16> to vector<1x16x64xbf16>
    tpu.vector_store %arg9[%c3_77, %c0_78, %c192_79], %115 {strides = array<i32>} : memref<5x24x256xbf16, #tpu.memory_space<vmem>>, vector<1x16x64xbf16>,
    %116 = vector.extract_strided_slice %99 {offsets = [64, 0], sizes = [16, 64], strides = [1, 1]} : vector<80x64xbf16> to vector<16x64xbf16>
    %c4_80 = arith.constant 4 : index
    %c0_81 = arith.constant 0 : index
    %c192_82 = arith.constant 192 : index
    %117 = vector.load %arg9[%c4_80, %c0_81, %c192_82] : memref<5x24x256xbf16, #tpu.memory_space<vmem>>, vector<1x16x64xbf16>
    %118 = vector.shape_cast %117 : vector<1x16x64xbf16> to vector<16x64xbf16>
    %119 = vector.shape_cast %116 : vector<16x64xbf16> to vector<1x16x64xbf16>
    tpu.vector_store %arg9[%c4_80, %c0_81, %c192_82], %119 {strides = array<i32>} : memref<5x24x256xbf16, #tpu.memory_space<vmem>>, vector<1x16x64xbf16>,
    %c0_83 = arith.constant 0 : index
    %c0_84 = arith.constant 0 : index
    %120 = vector.load %arg4[%c0_83, %c0_84] : memref<1024x128xbf16, #tpu.memory_space<vmem>>, vector<1024x128xbf16>
    %c0_85 = arith.constant 0 : index
    %c0_86 = arith.constant 0 : index
    %121 = vector.load %arg5[%c0_85, %c0_86] : memref<1x128xf32, #tpu.memory_space<vmem>>, vector<1x128xf32>
    %c0_87 = arith.constant 0 : index
    %c0_88 = arith.constant 0 : index
    %c0_89 = arith.constant 0 : index
    %122 = vector.load %arg9[%c0_87, %c0_88, %c0_89] : memref<5x24x256xbf16, #tpu.memory_space<vmem>>, vector<1x16x256xbf16>
    %123 = vector.shape_cast %122 : vector<1x16x256xbf16> to vector<16x256xbf16>
    %c0_90 = arith.constant 0 : index
    %c1_91 = arith.constant 1 : index
    %c0_92 = arith.constant 0 : index
    %124 = vector.load %arg9[%c0_90, %c1_91, %c0_92] : memref<5x24x256xbf16, #tpu.memory_space<vmem>>, vector<1x16x256xbf16>
    %125 = vector.shape_cast %124 : vector<1x16x256xbf16> to vector<16x256xbf16>
    %c1_93 = arith.constant 1 : index
    %c0_94 = arith.constant 0 : index
    %c0_95 = arith.constant 0 : index
    %126 = vector.load %arg9[%c1_93, %c0_94, %c0_95] : memref<5x24x256xbf16, #tpu.memory_space<vmem>>, vector<1x16x256xbf16>
    %127 = vector.shape_cast %126 : vector<1x16x256xbf16> to vector<16x256xbf16>
    %c1_96 = arith.constant 1 : index
    %c1_97 = arith.constant 1 : index
    %c0_98 = arith.constant 0 : index
    %128 = vector.load %arg9[%c1_96, %c1_97, %c0_98] : memref<5x24x256xbf16, #tpu.memory_space<vmem>>, vector<1x16x256xbf16>
    %129 = vector.shape_cast %128 : vector<1x16x256xbf16> to vector<16x256xbf16>
    %130 = tpu.concatenate %123, %125, %127, %129 in 1 : vector<16x256xbf16>, vector<16x256xbf16>, vector<16x256xbf16>, vector<16x256xbf16> -> vector<16x1024xbf16>
    %cst_99 = arith.constant dense<0.000000e+00> : vector<16x128xf32>
    %131 = tpu.matmul %130, %120, %cst_99 {dimension_numbers = #tpu.dot_dimension_numbers<[1], [0], [0], [1], [0, 0, 1, 1], [], []>} : vector<16x1024xbf16>, vector<1024x128xbf16>, vector<16x128xf32> -> vector<16x128xf32>
    %132 = vector.broadcast %121 : vector<1x128xf32> to vector<16x128xf32>
    %133 = arith.addf %131, %132 : vector<16x128xf32>
    %cst_100 = arith.constant 2.000000e-01 : f32
    %134 = vector.broadcast %cst_100 : f32 to vector<16x128xf32>
    %135 = arith.mulf %134, %133 : vector<16x128xf32>
    %136 = arith.maximumf %133, %135 : vector<16x128xf32>
    %c0_101 = arith.constant 0 : index
    %c0_102 = arith.constant 0 : index
    %c0_103 = arith.constant 0 : index
    %137 = vector.load %arg10[%c0_101, %c0_102, %c0_103] : memref<4x16x128xf32, #tpu.memory_space<vmem>>, vector<1x16x128xf32>
    %138 = vector.shape_cast %137 : vector<1x16x128xf32> to vector<16x128xf32>
    %139 = vector.shape_cast %136 : vector<16x128xf32> to vector<1x16x128xf32>
    tpu.vector_store %arg10[%c0_101, %c0_102, %c0_103], %139 {strides = array<i32>} : memref<4x16x128xf32, #tpu.memory_space<vmem>>, vector<1x16x128xf32>,
    %c1_104 = arith.constant 1 : index
    %c0_105 = arith.constant 0 : index
    %c0_106 = arith.constant 0 : index
    %140 = vector.load %arg9[%c1_104, %c0_105, %c0_106] : memref<5x24x256xbf16, #tpu.memory_space<vmem>>, vector<1x16x256xbf16>
    %141 = vector.shape_cast %140 : vector<1x16x256xbf16> to vector<16x256xbf16>
    %c1_107 = arith.constant 1 : index
    %c1_108 = arith.constant 1 : index
    %c0_109 = arith.constant 0 : index
    %142 = vector.load %arg9[%c1_107, %c1_108, %c0_109] : memref<5x24x256xbf16, #tpu.memory_space<vmem>>, vector<1x16x256xbf16>
    %143 = vector.shape_cast %142 : vector<1x16x256xbf16> to vector<16x256xbf16>
    %c2_110 = arith.constant 2 : index
    %c0_111 = arith.constant 0 : index
    %c0_112 = arith.constant 0 : index
    %144 = vector.load %arg9[%c2_110, %c0_111, %c0_112] : memref<5x24x256xbf16, #tpu.memory_space<vmem>>, vector<1x16x256xbf16>
    %145 = vector.shape_cast %144 : vector<1x16x256xbf16> to vector<16x256xbf16>
    %c2_113 = arith.constant 2 : index
    %c1_114 = arith.constant 1 : index
    %c0_115 = arith.constant 0 : index
    %146 = vector.load %arg9[%c2_113, %c1_114, %c0_115] : memref<5x24x256xbf16, #tpu.memory_space<vmem>>, vector<1x16x256xbf16>
    %147 = vector.shape_cast %146 : vector<1x16x256xbf16> to vector<16x256xbf16>
    %148 = tpu.concatenate %141, %143, %145, %147 in 1 : vector<16x256xbf16>, vector<16x256xbf16>, vector<16x256xbf16>, vector<16x256xbf16> -> vector<16x1024xbf16>
    %cst_116 = arith.constant dense<0.000000e+00> : vector<16x128xf32>
    %149 = tpu.matmul %148, %120, %cst_116 {dimension_numbers = #tpu.dot_dimension_numbers<[1], [0], [0], [1], [0, 0, 1, 1], [], []>} : vector<16x1024xbf16>, vector<1024x128xbf16>, vector<16x128xf32> -> vector<16x128xf32>
    %150 = vector.broadcast %121 : vector<1x128xf32> to vector<16x128xf32>
    %151 = arith.addf %149, %150 : vector<16x128xf32>
    %cst_117 = arith.constant 2.000000e-01 : f32
    %152 = vector.broadcast %cst_117 : f32 to vector<16x128xf32>
    %153 = arith.mulf %152, %151 : vector<16x128xf32>
    %154 = arith.maximumf %151, %153 : vector<16x128xf32>
    %c1_118 = arith.constant 1 : index
    %c0_119 = arith.constant 0 : index
    %c0_120 = arith.constant 0 : index
    %155 = vector.load %arg10[%c1_118, %c0_119, %c0_120] : memref<4x16x128xf32, #tpu.memory_space<vmem>>, vector<1x16x128xf32>
    %156 = vector.shape_cast %155 : vector<1x16x128xf32> to vector<16x128xf32>
    %157 = vector.shape_cast %154 : vector<16x128xf32> to vector<1x16x128xf32>
    tpu.vector_store %arg10[%c1_118, %c0_119, %c0_120], %157 {strides = array<i32>} : memref<4x16x128xf32, #tpu.memory_space<vmem>>, vector<1x16x128xf32>,
    %c2_121 = arith.constant 2 : index
    %c0_122 = arith.constant 0 : index
    %c0_123 = arith.constant 0 : index
    %158 = vector.load %arg9[%c2_121, %c0_122, %c0_123] : memref<5x24x256xbf16, #tpu.memory_space<vmem>>, vector<1x16x256xbf16>
    %159 = vector.shape_cast %158 : vector<1x16x256xbf16> to vector<16x256xbf16>
    %c2_124 = arith.constant 2 : index
    %c1_125 = arith.constant 1 : index
    %c0_126 = arith.constant 0 : index
    %160 = vector.load %arg9[%c2_124, %c1_125, %c0_126] : memref<5x24x256xbf16, #tpu.memory_space<vmem>>, vector<1x16x256xbf16>
    %161 = vector.shape_cast %160 : vector<1x16x256xbf16> to vector<16x256xbf16>
    %c3_127 = arith.constant 3 : index
    %c0_128 = arith.constant 0 : index
    %c0_129 = arith.constant 0 : index
    %162 = vector.load %arg9[%c3_127, %c0_128, %c0_129] : memref<5x24x256xbf16, #tpu.memory_space<vmem>>, vector<1x16x256xbf16>
    %163 = vector.shape_cast %162 : vector<1x16x256xbf16> to vector<16x256xbf16>
    %c3_130 = arith.constant 3 : index
    %c1_131 = arith.constant 1 : index
    %c0_132 = arith.constant 0 : index
    %164 = vector.load %arg9[%c3_130, %c1_131, %c0_132] : memref<5x24x256xbf16, #tpu.memory_space<vmem>>, vector<1x16x256xbf16>
    %165 = vector.shape_cast %164 : vector<1x16x256xbf16> to vector<16x256xbf16>
    %166 = tpu.concatenate %159, %161, %163, %165 in 1 : vector<16x256xbf16>, vector<16x256xbf16>, vector<16x256xbf16>, vector<16x256xbf16> -> vector<16x1024xbf16>
    %cst_133 = arith.constant dense<0.000000e+00> : vector<16x128xf32>
    %167 = tpu.matmul %166, %120, %cst_133 {dimension_numbers = #tpu.dot_dimension_numbers<[1], [0], [0], [1], [0, 0, 1, 1], [], []>} : vector<16x1024xbf16>, vector<1024x128xbf16>, vector<16x128xf32> -> vector<16x128xf32>
    %168 = vector.broadcast %121 : vector<1x128xf32> to vector<16x128xf32>
    %169 = arith.addf %167, %168 : vector<16x128xf32>
    %cst_134 = arith.constant 2.000000e-01 : f32
    %170 = vector.broadcast %cst_134 : f32 to vector<16x128xf32>
    %171 = arith.mulf %170, %169 : vector<16x128xf32>
    %172 = arith.maximumf %169, %171 : vector<16x128xf32>
    %c2_135 = arith.constant 2 : index
    %c0_136 = arith.constant 0 : index
    %c0_137 = arith.constant 0 : index
    %173 = vector.load %arg10[%c2_135, %c0_136, %c0_137] : memref<4x16x128xf32, #tpu.memory_space<vmem>>, vector<1x16x128xf32>
    %174 = vector.shape_cast %173 : vector<1x16x128xf32> to vector<16x128xf32>
    %175 = vector.shape_cast %172 : vector<16x128xf32> to vector<1x16x128xf32>
    tpu.vector_store %arg10[%c2_135, %c0_136, %c0_137], %175 {strides = array<i32>} : memref<4x16x128xf32, #tpu.memory_space<vmem>>, vector<1x16x128xf32>,
    %c3_138 = arith.constant 3 : index
    %c0_139 = arith.constant 0 : index
    %c0_140 = arith.constant 0 : index
    %176 = vector.load %arg9[%c3_138, %c0_139, %c0_140] : memref<5x24x256xbf16, #tpu.memory_space<vmem>>, vector<1x16x256xbf16>
    %177 = vector.shape_cast %176 : vector<1x16x256xbf16> to vector<16x256xbf16>
    %c3_141 = arith.constant 3 : index
    %c1_142 = arith.constant 1 : index
    %c0_143 = arith.constant 0 : index
    %178 = vector.load %arg9[%c3_141, %c1_142, %c0_143] : memref<5x24x256xbf16, #tpu.memory_space<vmem>>, vector<1x16x256xbf16>
    %179 = vector.shape_cast %178 : vector<1x16x256xbf16> to vector<16x256xbf16>
    %c4_144 = arith.constant 4 : index
    %c0_145 = arith.constant 0 : index
    %c0_146 = arith.constant 0 : index
    %180 = vector.load %arg9[%c4_144, %c0_145, %c0_146] : memref<5x24x256xbf16, #tpu.memory_space<vmem>>, vector<1x16x256xbf16>
    %181 = vector.shape_cast %180 : vector<1x16x256xbf16> to vector<16x256xbf16>
    %c4_147 = arith.constant 4 : index
    %c1_148 = arith.constant 1 : index
    %c0_149 = arith.constant 0 : index
    %182 = vector.load %arg9[%c4_147, %c1_148, %c0_149] : memref<5x24x256xbf16, #tpu.memory_space<vmem>>, vector<1x16x256xbf16>
    %183 = vector.shape_cast %182 : vector<1x16x256xbf16> to vector<16x256xbf16>
    %184 = tpu.concatenate %177, %179, %181, %183 in 1 : vector<16x256xbf16>, vector<16x256xbf16>, vector<16x256xbf16>, vector<16x256xbf16> -> vector<16x1024xbf16>
    %cst_150 = arith.constant dense<0.000000e+00> : vector<16x128xf32>
    %185 = tpu.matmul %184, %120, %cst_150 {dimension_numbers = #tpu.dot_dimension_numbers<[1], [0], [0], [1], [0, 0, 1, 1], [], []>} : vector<16x1024xbf16>, vector<1024x128xbf16>, vector<16x128xf32> -> vector<16x128xf32>
    %186 = vector.broadcast %121 : vector<1x128xf32> to vector<16x128xf32>
    %187 = arith.addf %185, %186 : vector<16x128xf32>
    %cst_151 = arith.constant 2.000000e-01 : f32
    %188 = vector.broadcast %cst_151 : f32 to vector<16x128xf32>
    %189 = arith.mulf %188, %187 : vector<16x128xf32>
    %190 = arith.maximumf %187, %189 : vector<16x128xf32>
    %c3_152 = arith.constant 3 : index
    %c0_153 = arith.constant 0 : index
    %c0_154 = arith.constant 0 : index
    %191 = vector.load %arg10[%c3_152, %c0_153, %c0_154] : memref<4x16x128xf32, #tpu.memory_space<vmem>>, vector<1x16x128xf32>
    %192 = vector.shape_cast %191 : vector<1x16x128xf32> to vector<16x128xf32>
    %193 = vector.shape_cast %190 : vector<16x128xf32> to vector<1x16x128xf32>
    tpu.vector_store %arg10[%c3_152, %c0_153, %c0_154], %193 {strides = array<i32>} : memref<4x16x128xf32, #tpu.memory_space<vmem>>, vector<1x16x128xf32>,
    %c0_155 = arith.constant 0 : index
    %c0_156 = arith.constant 0 : index
    %c0_157 = arith.constant 0 : index
    %194 = vector.load %arg10[%c0_155, %c0_156, %c0_157] : memref<4x16x128xf32, #tpu.memory_space<vmem>>, vector<1x16x128xf32>
    %195 = vector.shape_cast %194 : vector<1x16x128xf32> to vector<16x128xf32>
    %196 = vector.shape_cast %195 : vector<16x128xf32> to vector<2x8x128xf32>
    %c0_158 = arith.constant 0 : index
    %c0_159 = arith.constant 0 : index
    %c0_160 = arith.constant 0 : index
    %197 = vector.load %arg6[%c0_158, %c0_159, %c0_160] : memref<4x8x128xf32, #tpu.memory_space<vmem>>, vector<1x8x128xf32>
    %198 = vector.shape_cast %197 : vector<1x8x128xf32> to vector<8x128xf32>
    %199 = vector.shape_cast %198 : vector<8x128xf32> to vector<1x8x128xf32>
    %200 = vector.broadcast %199 : vector<1x8x128xf32> to vector<2x8x128xf32>
    %201 = arith.mulf %196, %200 : vector<2x8x128xf32>
    %c1_161 = arith.constant 1 : index
    %c0_162 = arith.constant 0 : index
    %c0_163 = arith.constant 0 : index
    %202 = vector.load %arg10[%c1_161, %c0_162, %c0_163] : memref<4x16x128xf32, #tpu.memory_space<vmem>>, vector<1x16x128xf32>
    %203 = vector.shape_cast %202 : vector<1x16x128xf32> to vector<16x128xf32>
    %204 = vector.shape_cast %203 : vector<16x128xf32> to vector<2x8x128xf32>
    %c1_164 = arith.constant 1 : index
    %c0_165 = arith.constant 0 : index
    %c0_166 = arith.constant 0 : index
    %205 = vector.load %arg6[%c1_164, %c0_165, %c0_166] : memref<4x8x128xf32, #tpu.memory_space<vmem>>, vector<1x8x128xf32>
    %206 = vector.shape_cast %205 : vector<1x8x128xf32> to vector<8x128xf32>
    %207 = vector.shape_cast %206 : vector<8x128xf32> to vector<1x8x128xf32>
    %208 = vector.broadcast %207 : vector<1x8x128xf32> to vector<2x8x128xf32>
    %209 = arith.mulf %204, %208 : vector<2x8x128xf32>
    %210 = arith.addf %201, %209 : vector<2x8x128xf32>
    %c2_167 = arith.constant 2 : index
    %c0_168 = arith.constant 0 : index
    %c0_169 = arith.constant 0 : index
    %211 = vector.load %arg10[%c2_167, %c0_168, %c0_169] : memref<4x16x128xf32, #tpu.memory_space<vmem>>, vector<1x16x128xf32>
    %212 = vector.shape_cast %211 : vector<1x16x128xf32> to vector<16x128xf32>
    %213 = vector.shape_cast %212 : vector<16x128xf32> to vector<2x8x128xf32>
    %c2_170 = arith.constant 2 : index
    %c0_171 = arith.constant 0 : index
    %c0_172 = arith.constant 0 : index
    %214 = vector.load %arg6[%c2_170, %c0_171, %c0_172] : memref<4x8x128xf32, #tpu.memory_space<vmem>>, vector<1x8x128xf32>
    %215 = vector.shape_cast %214 : vector<1x8x128xf32> to vector<8x128xf32>
    %216 = vector.shape_cast %215 : vector<8x128xf32> to vector<1x8x128xf32>
    %217 = vector.broadcast %216 : vector<1x8x128xf32> to vector<2x8x128xf32>
    %218 = arith.mulf %213, %217 : vector<2x8x128xf32>
    %219 = arith.addf %210, %218 : vector<2x8x128xf32>
    %c3_173 = arith.constant 3 : index
    %c0_174 = arith.constant 0 : index
    %c0_175 = arith.constant 0 : index
    %220 = vector.load %arg10[%c3_173, %c0_174, %c0_175] : memref<4x16x128xf32, #tpu.memory_space<vmem>>, vector<1x16x128xf32>
    %221 = vector.shape_cast %220 : vector<1x16x128xf32> to vector<16x128xf32>
    %222 = vector.shape_cast %221 : vector<16x128xf32> to vector<2x8x128xf32>
    %c3_176 = arith.constant 3 : index
    %c0_177 = arith.constant 0 : index
    %c0_178 = arith.constant 0 : index
    %223 = vector.load %arg6[%c3_176, %c0_177, %c0_178] : memref<4x8x128xf32, #tpu.memory_space<vmem>>, vector<1x8x128xf32>
    %224 = vector.shape_cast %223 : vector<1x8x128xf32> to vector<8x128xf32>
    %225 = vector.shape_cast %224 : vector<8x128xf32> to vector<1x8x128xf32>
    %226 = vector.broadcast %225 : vector<1x8x128xf32> to vector<2x8x128xf32>
    %227 = arith.mulf %222, %226 : vector<2x8x128xf32>
    %228 = arith.addf %219, %227 : vector<2x8x128xf32>
    %cst_179 = arith.constant dense<0.000000e+00> : vector<2x8xf32>
    %229 = vector.multi_reduction <add>, %228, %cst_179 [2] : vector<2x8x128xf32> to vector<2x8xf32>
    %230 = vector.shape_cast %229 : vector<2x8xf32> to vector<2x8x1xf32>
    %cst_180 = arith.constant dense<0.000000e+00> : vector<2x1xf32>
    %231 = vector.multi_reduction <add>, %230, %cst_180 [1] : vector<2x8x1xf32> to vector<2x1xf32>
    %232 = vector.shape_cast %231 : vector<2x1xf32> to vector<2x1x1xf32>
    %c0_181 = arith.constant 0 : index
    %c0_182 = arith.constant 0 : index
    %233 = vector.load %arg7[%c0_181, %c0_182] : memref<1x1xf32, #tpu.memory_space<vmem>>, vector<1x1xf32>
    %234 = vector.shape_cast %233 : vector<1x1xf32> to vector<1x1x1xf32>
    %235 = vector.broadcast %234 : vector<1x1x1xf32> to vector<2x1x1xf32>
    %236 = arith.addf %232, %235 : vector<2x1x1xf32>
    %237 = math.absf %236 : vector<2x1x1xf32>
    %cst_183 = arith.constant 0.000000e+00 : f32
    %238 = vector.broadcast %cst_183 : f32 to vector<2x1x1xf32>
    %239 = arith.subf %238, %237 : vector<2x1x1xf32>
    %240 = math.exp %239 : vector<2x1x1xf32>
    %cst_184 = arith.constant 0.000000e+00 : f32
    %241 = vector.broadcast %cst_184 : f32 to vector<2x1x1xf32>
    %242 = arith.cmpf oge, %236, %241 : vector<2x1x1xf32>
    %cst_185 = arith.constant 1.000000e+00 : f32
    %243 = vector.broadcast %cst_185 : f32 to vector<2x1x1xf32>
    %244 = arith.addf %243, %240 : vector<2x1x1xf32>
    %cst_186 = arith.constant 1.000000e+00 : f32
    %245 = vector.broadcast %cst_186 : f32 to vector<2x1x1xf32>
    %246 = arith.divf %245, %244 : vector<2x1x1xf32>
    %cst_187 = arith.constant 1.000000e+00 : f32
    %247 = vector.broadcast %cst_187 : f32 to vector<2x1x1xf32>
    %248 = arith.addf %247, %240 : vector<2x1x1xf32>
    %249 = arith.divf %240, %248 : vector<2x1x1xf32>
    %250 = arith.select %242, %246, %249 : vector<2x1x1xi1>, vector<2x1x1xf32>
    %c0_188 = arith.constant 0 : index
    %c0_189 = arith.constant 0 : index
    %c0_190 = arith.constant 0 : index
    %251 = vector.load %arg8[%c0_188, %c0_189, %c0_190] : memref<2x1x1xf32, #tpu.memory_space<vmem>>, vector<2x1x1xf32>
    tpu.vector_store %arg8[%c0_188, %c0_189, %c0_190], %250 {strides = array<i32>} : memref<2x1x1xf32, #tpu.memory_space<vmem>>, vector<2x1x1xf32>,
    return
  }
  func.func @transform_0(%arg0: i32) -> (i32, i32, i32, i32) {
    %c0_i32 = arith.constant 0 : i32
    %c0_i32_0 = arith.constant 0 : i32
    %c0_i32_1 = arith.constant 0 : i32
    %c0_i32_2 = arith.constant 0 : i32
    return %c0_i32, %arg0, %c0_i32_0, %c0_i32_1 : i32, i32, i32, i32
  }
  func.func @transform_1(%arg0: i32) -> (i32, i32) {
    %c0_i32 = arith.constant 0 : i32
    %c0_i32_0 = arith.constant 0 : i32
    %c0_i32_1 = arith.constant 0 : i32
    return %c0_i32, %c0_i32_0 : i32, i32
  }
  func.func @transform_2(%arg0: i32) -> (i32, i32) {
    %c0_i32 = arith.constant 0 : i32
    %c0_i32_0 = arith.constant 0 : i32
    %c0_i32_1 = arith.constant 0 : i32
    return %c0_i32, %c0_i32_0 : i32, i32
  }
  func.func @transform_3(%arg0: i32) -> (i32, i32) {
    %c0_i32 = arith.constant 0 : i32
    %c0_i32_0 = arith.constant 0 : i32
    %c0_i32_1 = arith.constant 0 : i32
    return %c0_i32, %c0_i32_0 : i32, i32
  }
  func.func @transform_4(%arg0: i32) -> (i32, i32) {
    %c0_i32 = arith.constant 0 : i32
    %c0_i32_0 = arith.constant 0 : i32
    %c0_i32_1 = arith.constant 0 : i32
    return %c0_i32, %c0_i32_0 : i32, i32
  }
  func.func @transform_5(%arg0: i32) -> (i32, i32, i32) {
    %c0_i32 = arith.constant 0 : i32
    %c0_i32_0 = arith.constant 0 : i32
    %c0_i32_1 = arith.constant 0 : i32
    %c0_i32_2 = arith.constant 0 : i32
    return %c0_i32, %c0_i32_0, %c0_i32_1 : i32, i32, i32
  }
  func.func @transform_6(%arg0: i32) -> (i32, i32) {
    %c0_i32 = arith.constant 0 : i32
    %c0_i32_0 = arith.constant 0 : i32
    %c0_i32_1 = arith.constant 0 : i32
    return %c0_i32, %c0_i32_0 : i32, i32
  }
  func.func @transform_7(%arg0: i32) -> (i32, i32, i32) {
    %c0_i32 = arith.constant 0 : i32
    %c0_i32_0 = arith.constant 0 : i32
    %c0_i32_1 = arith.constant 0 : i32
    return %arg0, %c0_i32, %c0_i32_0 : i32, i32, i32
  }
}

</mosaic_0001>

<bundles_post_ra>
// kernel: discriminator_forward.1
= control target key start
LH: loop header
LB: loop body
LE: loop exit
PB: predicated region body
PF: predicated region fallthrough
CT: control target
= control target key end

     0   :  { %v3687_v56 = vmov 0   ;;  %vm344_vm0 = vcmask 519168   ;;  %s3688_s21 = smov 64   ;;  %vm557_vm1 = vcmask 1043968   ;;  %vm1190_vm2 = vsmask.f32 7424  ;;  %s4945_s1 = inlined_call_operand.vmem [shape: bf16[256,64], index: 1, kind: input, shape index: {}]   ;;  %s4946_s0 = inlined_call_operand.vmem [shape: bf16[4,1,80,256], index: 0, kind: input, shape index: {}]   ;;  %s4947_s2 = inlined_call_operand.vmem [shape: f32[1,64], index: 2, kind: input, shape index: {}]   ;;  %s4948_s3 = inlined_call_operand.vmem [shape: bf16[1024,128], index: 3, kind: input, shape index: {}]   ;;  %s4949_s4 = inlined_call_operand.vmem [shape: f32[1,128], index: 4, kind: input, shape index: {}]   ;;  %s4950_s5 = inlined_call_operand.vmem [shape: f32[4,8,128], index: 5, kind: input, shape index: {}]   ;;  %s4951_s6 = inlined_call_operand.<no memory space> [shape: f32[1,1], index: 6, kind: input, shape index: {}]   ;;  %s4952_s7 = inlined_call_operand.vmem [shape: f32[2,1,1], index: 7, kind: output, shape index: {}]  }
   0x1   :  { %v3475_v0 = vld [vmem:[%s4945_s1 + $0x40] sm:$0xff]   ;;  %v3738_v2 = vld [vmem:[%s4945_s1 + $0x48] sm:$0xff]   ;;  %v3749_v4 = vld [vmem:[%s4945_s1 + $0x50] sm:$0xff]   ;;  %29 = vst [vmem:[#allocation2] sm:$0xff] %v3687_v56  ;;  %vm2663_vm3 = vcmask 0  }
   0x2   :  { %v3476_v1 = vld [vmem:[%s4945_s1] sm:$0xff]   ;;  %2983 = vmatprep.subr.bf16.mxu1 %v3475_v0  ;;  %2937 = vmatprep.subr.bf16.mxu0 %v3475_v0  ;;  %v3743_v3 = vld [vmem:[%s4945_s1 + $0x8] sm:$0xff]   ;;  %v3756_v5 = vld [vmem:[%s4945_s1 + $0x10] sm:$0xff]   ;;  %30 = vst [vmem:[#allocation2 + $0x8] sm:$0xff] %v3687_v56 }
   0x3   :  { %2984 = vmatpush3.bf16.msra.mxu1 %v3476_v1  ;;  %2938 = vmatpush3.bf16.msra.mxu0 %v3476_v1  ;;  %v3763_v6 = vld [vmem:[%s4945_s1 + $0x58] sm:$0xff]   ;;  %v3777_v8 = vld [vmem:[%s4945_s1 + $0x60] sm:$0xff]   ;;  %v3791_v10 = vld [vmem:[%s4945_s1 + $0x68] sm:$0xff]   ;;  %31 = vst [vmem:[#allocation2 + $0x10] sm:$0xff] %v3687_v56 }
   0x4   :  { %2985 = vmatprep.subr.bf16.mxu1 %v3738_v2  ;;  %2939 = vmatprep.subr.bf16.mxu0 %v3738_v2  ;;  %v3770_v7 = vld [vmem:[%s4945_s1 + $0x18] sm:$0xff]   ;;  %v3784_v9 = vld [vmem:[%s4945_s1 + $0x20] sm:$0xff]   ;;  %v3801_v12 = vld [vmem:[%s4945_s1 + $0x28] sm:$0xff]   ;;  %32 = vst [vmem:[#allocation2 + $0x18] sm:$0xff] %v3687_v56 }
   0x5   :  { %v3493_v11 = vld [vmem:[%s4946_s0 + $0x54] ss:$8 sps:$4 sm:$0xff]   ;;  %v3491_v17 = vld [vmem:[%s4946_s0 + $0x50] ss:$8 sps:$4 sm:$0xff]   ;;  %v3523_v18 = vld [vmem:[%s4946_s0 + $0x4] ss:$8 sps:$4 sm:$0xff]  }
   0x6   :  { %480 = vmatprep.mubr.bf16.mxu1 %v3493_v11  ;;  %v3807_v13 = vld [vmem:[%s4945_s1 + $0x70] sm:$0xff]   ;;  %v3821_v15 = vld [vmem:[%s4945_s1 + $0x78] sm:$0xff]   ;;  %v3494_v19 = vld [vmem:[%s4946_s0 + $0x64] ss:$8 sps:$4 sm:$0xff]   ;;  %271 = vmatprep.mubr.bf16.mxu0 %v3523_v18  ;;  %33 = vst [vmem:[#allocation2 + $0x20] sm:$0xff] %v3687_v56 }
   0x7   :  { %2986 = vmatpush3.bf16.msra.mxu1 %v3743_v3  ;;  %2940 = vmatpush3.bf16.msra.mxu0 %v3743_v3  ;;  %v3815_v14 = vld [vmem:[%s4945_s1 + $0x30] sm:$0xff]   ;;  %v3829_v16 = vld [vmem:[%s4945_s1 + $0x38] sm:$0xff]   ;;  %v3521_v20 = vld [vmem:[%s4946_s0] ss:$8 sps:$4 sm:$0xff]   ;;  %34 = vst [vmem:[#allocation2 + $0x28] sm:$0xff] %v3687_v56 }
   0x8   :  { %2987 = vmatprep.subr.bf16.mxu1 %v3749_v4  ;;  %2941 = vmatprep.subr.bf16.mxu0 %v3749_v4  ;;  %v3524_v21 = vld [vmem:[%s4946_s0 + $0x14] ss:$8 sps:$4 sm:$0xff]   ;;  %v3496_v22 = vld [vmem:[%s4946_s0 + $0x60] ss:$8 sps:$4 sm:$0xff]   ;;  %v3526_v24 = vld [vmem:[%s4946_s0 + $0x10] ss:$8 sps:$4 sm:$0xff]  }
   0x9   :  { %v3497_v23 = vld [vmem:[%s4946_s0 + $0x74] ss:$8 sps:$4 sm:$0xff]   ;;  %v3527_v25 = vld [vmem:[%s4946_s0 + $0x24] ss:$8 sps:$4 sm:$0xff]   ;;  %v3499_v26 = vld [vmem:[%s4946_s0 + $0x70] ss:$8 sps:$4 sm:$0xff]  }
   0xa   :  { %v3500_v27 = vld [vmem:[%s4946_s0 + $0x84] ss:$8 sps:$4 sm:$0xff]   ;;  %v3529_v28 = vld [vmem:[%s4946_s0 + $0x20] ss:$8 sps:$4 sm:$0xff]   ;;  %v3530_v29 = vld [vmem:[%s4946_s0 + $0x34] ss:$8 sps:$4 sm:$0xff]  }
   0xb   :  { %2988 = vmatpush3.bf16.msra.mxu1 %v3756_v5  ;;  %2942 = vmatpush3.bf16.msra.mxu0 %v3756_v5  ;;  %v3502_v30 = vld [vmem:[%s4946_s0 + $0x80] ss:$8 sps:$4 sm:$0xff]   ;;  %v3503_v31 = vld [vmem:[%s4946_s0 + $0x94] ss:$8 sps:$4 sm:$0xff]   ;;  %v3532_v32 = vld [vmem:[%s4946_s0 + $0x30] ss:$8 sps:$4 sm:$0xff]  }
   0xc   :  { %2989 = vmatprep.subr.bf16.mxu1 %v3763_v6  ;;  %2943 = vmatprep.subr.bf16.mxu0 %v3763_v6  ;;  %v3533_v33 = vld [vmem:[%s4946_s0 + $0x44] ss:$8 sps:$4 sm:$0xff]   ;;  %v3505_v34 = vld [vmem:[%s4946_s0 + $0x90] ss:$8 sps:$4 sm:$0xff]   ;;  %v3508_v35 = vld [vmem:[%s4946_s0 + $0xf4] ss:$8 sps:$4 sm:$0xff]  }
   0xd   :  { %v3535_v36 = vld [vmem:[%s4946_s0 + $0x40] ss:$8 sps:$4 sm:$0xff]   ;;  %v3538_v37 = vld [vmem:[%s4946_s0 + $0xa4] ss:$8 sps:$4 sm:$0xff]   ;;  %v3506_v38 = vld [vmem:[%s4946_s0 + $0xf0] ss:$8 sps:$4 sm:$0xff]  }
   0xe   :  { %v3509_v39 = vld [vmem:[%s4946_s0 + $0x104] ss:$8 sps:$4 sm:$0xff]   ;;  %v3536_v40 = vld [vmem:[%s4946_s0 + $0xa0] ss:$8 sps:$4 sm:$0xff]   ;;  %v3539_v41 = vld [vmem:[%s4946_s0 + $0xb4] ss:$8 sps:$4 sm:$0xff]  }
   0xf   :  { %2990 = vmatpush3.bf16.msra.mxu1 %v3770_v7  ;;  %2944 = vmatpush3.bf16.msra.mxu0 %v3770_v7  ;;  %v3511_v42 = vld [vmem:[%s4946_s0 + $0x100] ss:$8 sps:$4 sm:$0xff]   ;;  %v3512_v43 = vld [vmem:[%s4946_s0 + $0x114] ss:$8 sps:$4 sm:$0xff]   ;;  %v3541_v44 = vld [vmem:[%s4946_s0 + $0xb0] ss:$8 sps:$4 sm:$0xff]  }
  0x10   :  { %2991 = vmatprep.subr.bf16.mxu1 %v3777_v8  ;;  %2945 = vmatprep.subr.bf16.mxu0 %v3777_v8  ;;  %v3542_v45 = vld [vmem:[%s4946_s0 + $0xc4] ss:$8 sps:$4 sm:$0xff]   ;;  %v3514_v46 = vld [vmem:[%s4946_s0 + $0x110] ss:$8 sps:$4 sm:$0xff]   ;;  %v3544_v48 = vld [vmem:[%s4946_s0 + $0xc0] ss:$8 sps:$4 sm:$0xff]  }
  0x11   :  { %v3515_v47 = vld [vmem:[%s4946_s0 + $0x124] ss:$8 sps:$4 sm:$0xff]   ;;  %v3545_v49 = vld [vmem:[%s4946_s0 + $0xd4] ss:$8 sps:$4 sm:$0xff]   ;;  %v3517_v50 = vld [vmem:[%s4946_s0 + $0x120] ss:$8 sps:$4 sm:$0xff]  }
  0x12   :  { %v3518_v51 = vld [vmem:[%s4946_s0 + $0x134] ss:$8 sps:$4 sm:$0xff]   ;;  %v3547_v52 = vld [vmem:[%s4946_s0 + $0xd0] ss:$8 sps:$4 sm:$0xff]   ;;  %v3548_v53 = vld [vmem:[%s4946_s0 + $0xe4] ss:$8 sps:$4 sm:$0xff]  }
  0x13   :  { %2992 = vmatpush3.bf16.msra.mxu1 %v3784_v9  ;;  %2946 = vmatpush3.bf16.msra.mxu0 %v3784_v9  ;;  %v3520_v54 = vld [vmem:[%s4946_s0 + $0x130] ss:$8 sps:$4 sm:$0xff]   ;;  %v3550_v55 = vld [vmem:[%s4946_s0 + $0xe0] ss:$8 sps:$4 sm:$0xff]   ;;  %35 = vst [vmem:[#allocation2 + $0x30] sm:$0xff] %v3687_v56  ;;  %36 = vst [vmem:[#allocation2 + $0x38] sm:$0xff] %v3687_v56 }
  0x14   :  { %2993 = vmatprep.subr.bf16.mxu1 %v3791_v10  ;;  %2947 = vmatprep.subr.bf16.mxu0 %v3791_v10  ;;  %37 = vst [vmem:[#allocation2 + $0x40] sm:$0xff] %v3687_v56  ;;  %38 = vst [vmem:[#allocation2 + $0x48] sm:$0xff] %v3687_v56  ;;  %v3984_v58 = vld [vmem:[%s4947_s2] ss:$0 sm:$0xff] }
  0x15   :  { %39 = vst [vmem:[#allocation2 + $0x50] sm:$0xff] %v3687_v56  ;;  %40 = vst [vmem:[#allocation2 + $0x58] sm:$0xff] %v3687_v56 }
  0x16   :  { %41 = vst [vmem:[#allocation2 + $0x60] sm:$0xff] %v3687_v56  ;;  %42 = vst [vmem:[#allocation2 + $0x68] sm:$0xff] %v3687_v56 }
  0x17   :  { %2994 = vmatpush3.bf16.msra.mxu1 %v3801_v12  ;;  %2948 = vmatpush3.bf16.msra.mxu0 %v3801_v12  ;;  %43 = vst [vmem:[#allocation2 + $0x70] sm:$0xff] %v3687_v56 }
  0x18   :  { %2995 = vmatprep.subr.bf16.mxu1 %v3807_v13  ;;  %2949 = vmatprep.subr.bf16.mxu0 %v3807_v13 }
  0x1b   :  { %2996 = vmatpush3.bf16.msra.mxu1 %v3815_v14  ;;  %2950 = vmatpush3.bf16.msra.mxu0 %v3815_v14 }
  0x1c   :  { %2997 = vmatprep.subr.bf16.mxu1 %v3821_v15  ;;  %2951 = vmatprep.subr.bf16.mxu0 %v3821_v15 }
  0x1f   :  { %2998 = vmatpush3.bf16.msra.mxu1 %v3829_v16  ;;  %2952 = vmatpush3.bf16.msra.mxu0 %v3829_v16 }
  0x20   :  { %3075 = vmatprep.subr.bf16.mxu1 %v3475_v0  ;;  %3029 = vmatprep.subr.bf16.mxu0 %v3475_v0 }
  0x22   :  { %481 = vmatmul.mubr.bf16.vlgmr.msra.gmra.mrb[0].mxu1 %v3491_v17  ;;  %272 = vmatmul.mubr.bf16.vlgmr.msra.gmra.mrb[0].mxu0 %v3521_v20  ;;  %v3552_v17 = vld [vmem:[%s4948_s3] sm:$0xff]  }
  0x23   :  { %3076 = vmatpush3.bf16.msra.mxu1 %v3476_v1  ;;  %488 = vmatprep.mubr.bf16.mxu1 %v3494_v19 }
  0x24   :  { %3077 = vmatprep.subr.bf16.mxu1 %v3738_v2  ;;  %3030 = vmatpush3.bf16.msra.mxu0 %v3476_v1 }
  0x25   :  { %279 = vmatprep.mubr.bf16.mxu0 %v3524_v21  ;;  %3031 = vmatprep.subr.bf16.mxu0 %v3738_v2 }
  0x27   :  { %3078 = vmatpush3.bf16.msra.mxu1 %v3743_v3 }
  0x28   :  { %3079 = vmatprep.subr.bf16.mxu1 %v3749_v4  ;;  %3032 = vmatpush3.bf16.msra.mxu0 %v3743_v3 }
  0x29   :  { %3033 = vmatprep.subr.bf16.mxu0 %v3749_v4 }
  0x2a   :  { %489 = vmatmul.mubr.bf16.gmra.mrb[4].mxu1 %v3496_v22  ;;  %280 = vmatmul.mubr.bf16.gmra.mrb[4].mxu0 %v3526_v24 }
  0x2b   :  { %3080 = vmatpush3.bf16.msra.mxu1 %v3756_v5  ;;  %496 = vmatprep.mubr.bf16.mxu1 %v3497_v23 }
  0x2c   :  { %3081 = vmatprep.subr.bf16.mxu1 %v3763_v6  ;;  %287 = vmatprep.mubr.bf16.mxu0 %v3527_v25 }
  0x2d   :  { %3034 = vmatpush3.bf16.msra.mxu0 %v3756_v5 }
  0x2e   :  { %3035 = vmatprep.subr.bf16.mxu0 %v3763_v6 }
  0x2f   :  { %3082 = vmatpush3.bf16.msra.mxu1 %v3770_v7 }
  0x30   :  { %3083 = vmatprep.subr.bf16.mxu1 %v3777_v8 }
  0x31   :  { %3036 = vmatpush3.bf16.msra.mxu0 %v3770_v7 }
  0x32   :  { %497 = vmatmul.mubr.bf16.gmra.mrb[8].mxu1 %v3499_v26  ;;  %3037 = vmatprep.subr.bf16.mxu0 %v3777_v8 }
  0x33   :  { %3084 = vmatpush3.bf16.msra.mxu1 %v3784_v9  ;;  %504 = vmatprep.mubr.bf16.mxu1 %v3500_v27 }
  0x34   :  { %3085 = vmatprep.subr.bf16.mxu1 %v3791_v10  ;;  %288 = vmatmul.mubr.bf16.gmra.mrb[8].mxu0 %v3529_v28 }
  0x35   :  { %295 = vmatprep.mubr.bf16.mxu0 %v3530_v29  ;;  %3038 = vmatpush3.bf16.msra.mxu0 %v3784_v9 }
  0x36   :  { %3039 = vmatprep.subr.bf16.mxu0 %v3791_v10 }
  0x37   :  { %3086 = vmatpush3.bf16.msra.mxu1 %v3801_v12 }
  0x38   :  { %3087 = vmatprep.subr.bf16.mxu1 %v3807_v13 }
  0x39   :  { %3040 = vmatpush3.bf16.msra.mxu0 %v3801_v12 }
  0x3a   :  { %505 = vmatmul.mubr.bf16.gmra.mrb[12].mxu1 %v3502_v30  ;;  %3041 = vmatprep.subr.bf16.mxu0 %v3807_v13 }
  0x3b   :  { %512 = vmatprep.mubr.bf16.mxu1 %v3503_v31  ;;  %3088 = vmatpush3.bf16.msra.mxu1 %v3815_v14  ;;  %v3553_v31 = vld [vmem:[%s4948_s3 + $0xc0] sm:$0xff]  }
  0x3c   :  { %3089 = vmatprep.subr.bf16.mxu1 %v3821_v15  ;;  %296 = vmatmul.mubr.bf16.gmra.mrb[12].mxu0 %v3532_v32 }
  0x3d   :  { %303 = vmatprep.mubr.bf16.mxu0 %v3533_v33  ;;  %3042 = vmatpush3.bf16.msra.mxu0 %v3815_v14 }
  0x3e   :  { %3043 = vmatprep.subr.bf16.mxu0 %v3821_v15  ;;  %v3551_v15 = vld [vmem:[%s4948_s3 + $0x40] sm:$0xff]  }
  0x3f   :  { %3090 = vmatpush3.bf16.msra.mxu1 %v3829_v16 }
  0x40   :  { %3143 = vmatprep.subr.bf16.mxu1 %v3553_v31 }
  0x41   :  { %3044 = vmatpush3.bf16.msra.mxu0 %v3829_v16 }
  0x42   :  { %513 = vmatmul.mubr.bf16.gmra.mrb[16].mxu1 %v3505_v34  ;;  %3121 = vmatprep.subr.bf16.mxu0 %v3551_v15 }
  0x43   :  { %909 = vmatprep.mubr.bf16.mxu1 %v3508_v35  ;;  %v3554_v35 = vld [vmem:[%s4948_s3 + $0x80] sm:$0xff]  }
  0x44   :  { %304 = vmatmul.mubr.bf16.gmra.mrb[16].mxu0 %v3535_v36 }
  0x45   :  { %705 = vmatprep.mubr.bf16.mxu0 %v3538_v37 }
  0x4a   :  { %910 = vmatmul.mubr.bf16.vlgmr.msra.gmra.mrb[20].mxu1 %v3506_v38 }
  0x4b   :  { %917 = vmatprep.mubr.bf16.mxu1 %v3509_v39  ;;  %v3555_v39 = vld [vmem:[%s4948_s3 + $0x48] sm:$0xff]   ;;  %3144 = vmatpush3.bf16.msra.mxu1 %v3554_v35 }
  0x4c   :  { %706 = vmatmul.mubr.bf16.vlgmr.msra.gmra.mrb[20].mxu0 %v3536_v40  ;;  %v3556_v40 = vld [vmem:[%s4948_s3 + $0x8] sm:$0xff]  }
  0x4d   :  { %713 = vmatprep.mubr.bf16.mxu0 %v3539_v41  ;;  %3122 = vmatpush3.bf16.msra.mxu0 %v3552_v17 }
  0x4e   :  { %3123 = vmatprep.subr.bf16.mxu0 %v3555_v39 }
  0x51   :  { %3124 = vmatpush3.bf16.msra.mxu0 %v3556_v40 }
  0x52   :  { %918 = vmatmul.mubr.bf16.gmra.mrb[24].mxu1 %v3511_v42 }
  0x53   :  { %925 = vmatprep.mubr.bf16.mxu1 %v3512_v43 }
  0x54   :  { %714 = vmatmul.mubr.bf16.gmra.mrb[24].mxu0 %v3541_v44 }
  0x55   :  { %721 = vmatprep.mubr.bf16.mxu0 %v3542_v45 }
  0x5a   :  { %926 = vmatmul.mubr.bf16.gmra.mrb[28].mxu1 %v3514_v46  ;;  %v3557_v46 = vld [vmem:[%s4948_s3 + $0xc8] sm:$0xff]  }
  0x5b   :  { %933 = vmatprep.mubr.bf16.mxu1 %v3515_v47  ;;  %3145 = vmatprep.subr.bf16.mxu1 %v3557_v46 }
  0x5c   :  { %722 = vmatmul.mubr.bf16.gmra.mrb[28].mxu0 %v3544_v48 }
  0x5d   :  { %729 = vmatprep.mubr.bf16.mxu0 %v3545_v49  ;;  %v3558_v49 = vld [vmem:[%s4948_s3 + $0x88] sm:$0xff]  }
  0x5e   :  { %3146 = vmatpush3.bf16.msra.mxu1 %v3558_v49 }
  0x62   :  { %934 = vmatmul.mubr.bf16.gmra.mrb[32].mxu1 %v3517_v50 }
  0x63   :  { %941 = vmatprep.mubr.bf16.mxu1 %v3518_v51 }
  0x64   :  { %730 = vmatmul.mubr.bf16.gmra.mrb[32].mxu0 %v3547_v52 }
  0x65   :  { %737 = vmatprep.mubr.bf16.mxu0 %v3548_v53 }
  0x6a   :  { %942 = vmatmul.mubr.bf16.gmra.mrb[36].mxu1 %v3520_v54 }
  0x6c   :  { %738 = vmatmul.mubr.bf16.gmra.mrb[36].mxu0 %v3550_v55 }
  0xf5   :  { %v2999_v57 = vpop.f32.mrb[0].mxu1  ;;  %v2953_v62 = vpop.f32.mrb[0].mxu0 }
  0xf6   :  { %v3000_v59 = vpop.f32.mrb[1].mxu1  ;;  %v2954_v0 = vpop.f32.mrb[1].mxu0 }
  0xf7   :  { %v3001_v60 = vadd.f32 %v3000_v59, %v2999_v57  ;;  %v3002_v61 = vpop.f32.mrb[2].mxu1  ;;  %v2955_v3 = vadd.f32 %v2954_v0, %v2953_v62  ;;  %v2956_v4 = vpop.f32.mrb[2].mxu0  ;;  %v3559_v62 = vld [vmem:[%s4948_s3 + $0x50] sm:$0xff]  }
  0xf8   :  { %v3003_v63 = vpop.f32.mrb[3].mxu1  ;;  %v2957_v5 = vpop.f32.mrb[3].mxu0  ;;  %3125 = vmatprep.subr.bf16.mxu0 %v3559_v62  ;;  %v4107_v62 = vld [vmem:[%s4948_s3 + $0xa0] sm:$0xff]  }
  0xf9   :  { %v483_v1 = vadd.f32 %v3001_v60, %v3984_v58  ;;  %v3004_v2 = vadd.f32 %v3003_v63, %v3002_v61  ;;  %v274_v8 = vadd.f32 %v2955_v3, %v3984_v58  ;;  %v2958_v9 = vadd.f32 %v2957_v5, %v2956_v4  ;;  %v3561_v5 = vld [vmem:[%s4948_s3 + $0xd0] sm:$0xff]  }
  0xfa   :  { %3147 = vmatprep.subr.bf16.mxu1 %v3561_v5 }
  0xfb   :  { %v486_v6 = vadd.f32 %v3004_v2, %v3984_v58  ;;  %v521_v7 = vmul.f32 0.2, %v483_v1  ;;  %v312_v13 = vmul.f32 0.2, %v274_v8  ;;  %v277_v14 = vadd.f32 %v2958_v9, %v3984_v58  ;;  %v3560_v2 = vld [vmem:[%s4948_s3 + $0x10] sm:$0xff]  }
  0xfc   :  { %3126 = vmatpush3.bf16.msra.mxu0 %v3560_v2 }
  0xfd   :  { %v522_v10 = vmul.f32 0.2, %v486_v6  ;;  %v3005_v11 = vpop.f32.mrb[4].mxu1  ;;  %v531_v12 = vmax.f32 %v483_v1, %v521_v7  ;;  %v322_v22 = vmax.f32 %v274_v8, %v312_v13  ;;  %v2959_v23 = vpop.f32.mrb[4].mxu0  ;;  %v313_v25 = vmul.f32 0.2, %v277_v14 }
  0xfe   :  { %v3006_v16 = vpop.f32.mrb[5].mxu1  ;;  %v2960_v26 = vpop.f32.mrb[5].mxu0  ;;  %v3564_v13 = vld [vmem:[%s4948_s3 + $0x18] sm:$0xff]  }
  0xff   :  { %v3007_v18 = vadd.f32 %v3006_v16, %v3005_v11  ;;  %v3008_v19 = vpop.f32.mrb[6].mxu1  ;;  %v2907_v20 = vpack.c.bf16 %v531_v12, %v531_v12  ;;  %v532_v21 = vmax.f32 %v486_v6, %v522_v10  ;;  %v2897_v29 = vpack.c.bf16 %v322_v22, %v322_v22  ;;  %v2962_v30 = vpop.f32.mrb[6].mxu0  ;;  %v3562_v6 = vld [vmem:[%s4948_s3 + $0x90] sm:$0xff]   ;;  %v3563_v10 = vld [vmem:[%s4948_s3 + $0x58] sm:$0xff]   ;;  %v3566_v22 = vld [vmem:[%s4948_s3 + $0x60] sm:$0xff]  }
 0x100   :  { %v3009_v24 = vpop.f32.mrb[7].mxu1  ;;  %v323_v32 = vmax.f32 %v277_v14, %v313_v25  ;;  %v2961_v33 = vadd.f32 %v2960_v26, %v2959_v23  ;;  %v2963_v34 = vpop.f32.mrb[7].mxu0  ;;  %3148 = vmatpush3.bf16.msra.mxu1 %v3562_v6  ;;  %3127 = vmatprep.subr.bf16.mxu0 %v3563_v10  ;;  %v3567_v26 = vld [vmem:[%s4948_s3 + $0x98] sm:$0xff]  }
 0x101   :  { %v491_v27 = vadd.f32 %v3007_v18, %v3984_v58  ;;  %v3997_v28 = vadd.f32 %v3009_v24, %v3008_v19  ;;  %551 = vrot.lane.b32.xlu0 %v2907_v20, %s3688_s21  ;;  %v2908_v37 = vpack.c.bf16 %v532_v21, %v532_v21  ;;  %v2964_v38 = vadd.f32 %v2963_v34, %v2962_v30  ;;  %v3565_v21 = vld [vmem:[%s4948_s3 + $0xd8] sm:$0xff]  }
 0x102   :  { %345 = vst.msk [vmem:[#allocation2] sm:$0xf] %vm344_vm0, %v2897_v29  ;;  %v2898_v41 = vpack.c.bf16 %v323_v32, %v323_v32  ;;  %v282_v42 = vadd.f32 %v2961_v33, %v3984_v58  ;;  %3128 = vmatpush3.bf16.msra.mxu0 %v3564_v13  ;;  %3149 = vmatprep.subr.bf16.mxu1 %v3565_v21  ;;  %v4131_v13 = vld [vmem:[%s4948_s3 + $0xe8] sm:$0xff]  }
 0x103   :  { %v523_v36 = vmul.f32 0.2, %v491_v27  ;;  %v285_v45 = vadd.f32 %v2964_v38, %v3984_v58  ;;  %3129 = vmatprep.subr.bf16.mxu0 %v3566_v22  ;;  %v4069_v38 = vadd.f32 %v3997_v28, %v3984_v58 }
 0x104   :  { %v314_v48 = vmul.f32 0.2, %v282_v42  ;;  %346 = vst.msk [vmem:[#allocation2 + $0x8] sm:$0xf] %vm344_vm0, %v2898_v41  ;;  %3150 = vmatpush3.bf16.msra.mxu1 %v3567_v26 }
 0x105   :  { %v3011_v43 = vpop.f32.mrb[8].mxu1  ;;  %553 = vrot.lane.b32.xlu0 %v2908_v37, %s3688_s21  ;;  %v533_v44 = vmax.f32 %v491_v27, %v523_v36  ;;  %v315_v53 = vmul.f32 0.2, %v285_v45 }
 0x106   :  { %v3012_v47 = vpop.f32.mrb[9].mxu1  ;;  %v324_v56 = vmax.f32 %v282_v42, %v314_v48 }
 0x107   :  { %v4023_v50 = vadd.f32 %v3012_v47, %v3011_v43  ;;  %v3014_v51 = vpop.f32.mrb[10].mxu1  ;;  %v2909_v52 = vpack.c.bf16 %v533_v44, %v533_v44  ;;  %v2965_v54 = vpop.f32.mrb[8].mxu0  ;;  %v325_v60 = vmax.f32 %v285_v45, %v315_v53  ;;  %v3568_v47 = vld [vmem:[%s4948_s3 + $0x20] sm:$0xff]  }
 0x108   :  { %v3015_v55 = vpop.f32.mrb[11].mxu1  ;;  %v2966_v57 = vpop.f32.mrb[9].mxu0  ;;  %v2899_v63 = vpack.c.bf16 %v324_v56, %v324_v56  ;;  %3130 = vmatpush3.bf16.msra.mxu0 %v3568_v47 }
 0x109   :  { %v4025_v59 = vadd.f32 %v3015_v55, %v3014_v51  ;;  %565 = vrot.lane.b32.xlu0 %v2909_v52, %s3688_s21  ;;  %v2968_v61 = vpop.f32.mrb[10].mxu0  ;;  %v2967_v0 = vadd.f32 %v2966_v57, %v2965_v54  ;;  %v2900_v3 = vpack.c.bf16 %v325_v60, %v325_v60  ;;  %v4075_v43 = vadd.f32 %v4023_v50, %v3984_v58  ;;  %v4092_v57 = vld [vmem:[%s4948_s3 + $0x68] sm:$0xff]  }
 0x10a   :  { %v2969_v1 = vpop.f32.mrb[11].mxu0  ;;  %355 = vst.msk [vmem:[#allocation2 + $0x18] sm:$0xf] %vm344_vm0, %v2899_v63  ;;  %v4087_v50 = vmul.f32 0.2, %v4069_v38  ;;  %v4112_v63 = vld [vmem:[%s4948_s3 + $0x28] sm:$0xff]   ;;  %3131 = vmatprep.subr.bf16.mxu0 %v4092_v57 }
 0x10b   :  { %v2970_v4 = vadd.f32 %v2969_v1, %v2968_v61  ;;  %v290_v7 = vadd.f32 %v2967_v0, %v3984_v58  ;;  %356 = vst.msk [vmem:[#allocation2 + $0x20] sm:$0xf] %vm344_vm0, %v2900_v3  ;;  %v4082_v28 = vadd.f32 %v4025_v59, %v3984_v58  ;;  %v4095_v59 = vmul.f32 0.2, %v4075_v43  ;;  %v4102_v61 = vld [vmem:[%s4948_s3 + $0xe0] sm:$0xff]  }
 0x10c   :  { %3151 = vmatprep.subr.bf16.mxu1 %v4102_v61  ;;  %3132 = vmatpush3.bf16.msra.mxu0 %v4112_v63 }
 0x10d   :  { %v3017_v8 = vpop.f32.mrb[12].mxu1  ;;  %v293_v9 = vadd.f32 %v2970_v4, %v3984_v58  ;;  %v316_v12 = vmul.f32 0.2, %v290_v7  ;;  %v4115_v0 = vmul.f32 0.2, %v4082_v28  ;;  %3152 = vmatpush3.bf16.msra.mxu1 %v4107_v62 }
 0x10e   :  { %v3018_v11 = vpop.f32.mrb[13].mxu1  ;;  %3153 = vmatprep.subr.bf16.mxu1 %v4131_v13 }
 0x10f   :  { %v4050_v14 = vadd.f32 %v3018_v11, %v3017_v8  ;;  %v3020_v15 = vpop.f32.mrb[14].mxu1  ;;  %v317_v16 = vmul.f32 0.2, %v293_v9  ;;  %v2971_v17 = vpop.f32.mrb[12].mxu0  ;;  %v326_v19 = vmax.f32 %v290_v7, %v316_v12 }
 0x110   :  { %v3021_v18 = vpop.f32.mrb[15].mxu1  ;;  %v2972_v20 = vpop.f32.mrb[13].mxu0 }
 0x111   :  { %v4058_v23 = vadd.f32 %v3021_v18, %v3020_v15  ;;  %v327_v24 = vmax.f32 %v293_v9, %v317_v16  ;;  %v2974_v25 = vpop.f32.mrb[14].mxu0  ;;  %v2901_v27 = vpack.c.bf16 %v326_v19, %v326_v19  ;;  %v2973_v29 = vadd.f32 %v2972_v20, %v2971_v17  ;;  %v4126_v9 = vld [vmem:[%s4948_s3 + $0x70] sm:$0xff]  }
 0x112   :  { %v2975_v30 = vpop.f32.mrb[15].mxu0  ;;  %v4136_v15 = vld [vmem:[%s4948_s3 + $0x30] sm:$0xff]   ;;  %3133 = vmatprep.subr.bf16.mxu0 %v4126_v9 }
 0x113   :  { %v2902_v31 = vpack.c.bf16 %v327_v24, %v327_v24  ;;  %v2976_v32 = vadd.f32 %v2975_v30, %v2974_v25  ;;  %365 = vst.msk [vmem:[#allocation2 + $0x30] sm:$0xf] %vm344_vm0, %v2901_v27  ;;  %v298_v33 = vadd.f32 %v2973_v29, %v3984_v58  ;;  %3134 = vmatpush3.bf16.msra.mxu0 %v4136_v15  ;;  %v4146_v29 = vld [vmem:[%s4948_s3 + $0xa8] sm:$0xff]   ;;  %v4151_v30 = vld [vmem:[%s4948_s3 + $0x78] sm:$0xff]  }
 0x114   :  { %3154 = vmatpush3.bf16.msra.mxu1 %v4146_v29  ;;  %3135 = vmatprep.subr.bf16.mxu0 %v4151_v30 }
 0x115   :  { %v3023_v34 = vpop.f32.mrb[16].mxu1  ;;  %366 = vst.msk [vmem:[#allocation2 + $0x38] sm:$0xf] %vm344_vm0, %v2902_v31  ;;  %v301_v35 = vadd.f32 %v2976_v32, %v3984_v58  ;;  %v318_v37 = vmul.f32 0.2, %v298_v33  ;;  %v4158_v32 = vld [vmem:[%s4948_s3 + $0x38] sm:$0xff]  }
 0x116   :  { %v3024_v36 = vpop.f32.mrb[17].mxu1 }
 0x117   :  { %v4071_v39 = vadd.f32 %v3024_v36, %v3023_v34  ;;  %v3026_v40 = vpop.f32.mrb[18].mxu1  ;;  %v319_v41 = vmul.f32 0.2, %v301_v35  ;;  %v2977_v42 = vpop.f32.mrb[16].mxu0  ;;  %v328_v45 = vmax.f32 %v298_v33, %v318_v37  ;;  %3136 = vmatpush3.bf16.msra.mxu0 %v4158_v32 }
 0x118   :  { %v3027_v44 = vpop.f32.mrb[19].mxu1  ;;  %v2978_v46 = vpop.f32.mrb[17].mxu0 }
 0x119   :  { %v4084_v48 = vadd.f32 %v3027_v44, %v3026_v40  ;;  %v329_v49 = vmax.f32 %v301_v35, %v319_v41  ;;  %v2980_v51 = vpop.f32.mrb[18].mxu0  ;;  %v2903_v52 = vpack.c.bf16 %v328_v45, %v328_v45  ;;  %v2979_v53 = vadd.f32 %v2978_v46, %v2977_v42  ;;  %v4168_v41 = vld [vmem:[%s4948_s3 + $0xf0] sm:$0xff]  }
 0x11a   :  { %v2981_v54 = vpop.f32.mrb[19].mxu0  ;;  %3155 = vmatprep.subr.bf16.mxu1 %v4168_v41 }
 0x11b   :  { %v2904_v55 = vpack.c.bf16 %v329_v49, %v329_v49  ;;  %v2982_v56 = vadd.f32 %v2981_v54, %v2980_v51  ;;  %375 = vst.msk [vmem:[#allocation2 + $0x48] sm:$0xf] %vm344_vm0, %v2903_v52  ;;  %v306_v60 = vadd.f32 %v2979_v53, %v3984_v58  ;;  %v4173_v51 = vld [vmem:[%s4948_s3 + $0xb0] sm:$0xff]   ;;  %v4178_v52 = vld [vmem:[%s4948_s3 + $0x140] sm:$0xff]  }
 0x11c   :  { %3156 = vmatpush3.bf16.msra.mxu1 %v4173_v51  ;;  %3165 = vmatprep.subr.bf16.mxu0 %v4178_v52 }
 0x11d   :  { %v3091_v1 = vpop.f32.mrb[20].mxu1  ;;  %376 = vst.msk [vmem:[#allocation2 + $0x50] sm:$0xf] %vm344_vm0, %v2904_v55  ;;  %v309_v2 = vadd.f32 %v2982_v56, %v3984_v58  ;;  %v320_v4 = vmul.f32 0.2, %v306_v60 }
 0x11e   :  { %v3092_v3 = vpop.f32.mrb[21].mxu1 }
 0x11f   :  { %v3093_v5 = vadd.f32 %v3092_v3, %v3091_v1  ;;  %v3094_v6 = vpop.f32.mrb[22].mxu1  ;;  %v321_v7 = vmul.f32 0.2, %v309_v2  ;;  %v3045_v8 = vpop.f32.mrb[20].mxu0  ;;  %v330_v11 = vmax.f32 %v306_v60, %v320_v4  ;;  %v534_v1 = vmax.f32 %v4069_v38, %v4087_v50 }
 0x120   :  { %v3095_v10 = vpop.f32.mrb[23].mxu1  ;;  %v3046_v12 = vpop.f32.mrb[21].mxu0  ;;  %v507_v38 = vadd.f32 %v4050_v14, %v3984_v58 }
 0x121   :  { %v912_v16 = vadd.f32 %v3093_v5, %v3984_v58  ;;  %v3096_v17 = vadd.f32 %v3095_v10, %v3094_v6  ;;  %v331_v18 = vmax.f32 %v309_v2, %v321_v7  ;;  %v3048_v19 = vpop.f32.mrb[22].mxu0  ;;  %v2905_v20 = vpack.c.bf16 %v330_v11, %v330_v11 }
 0x122   :  { %v3047_v21 = vadd.f32 %v3046_v12, %v3045_v8  ;;  %v3049_v22 = vpop.f32.mrb[23].mxu0 }
 0x123   :  { %v915_v24 = vadd.f32 %v3096_v17, %v3984_v58  ;;  %v950_v25 = vmul.f32 0.2, %v912_v16  ;;  %v2906_v26 = vpack.c.bf16 %v331_v18, %v331_v18  ;;  %v3050_v27 = vadd.f32 %v3049_v22, %v3048_v19  ;;  %385 = vst.msk [vmem:[#allocation2 + $0x60] sm:$0xf] %vm344_vm0, %v2905_v20  ;;  %v4200_v17 = vld [vmem:[%s4948_s3 + $0xb8] sm:$0xff]  }
 0x124   :  { %v708_v31 = vadd.f32 %v3047_v21, %v3984_v58  ;;  %v2910_v22 = vpack.c.bf16 %v534_v1, %v534_v1 }
 0x125   :  { %v951_v33 = vmul.f32 0.2, %v915_v24  ;;  %v3097_v34 = vpop.f32.mrb[24].mxu1  ;;  %v960_v35 = vmax.f32 %v912_v16, %v950_v25  ;;  %386 = vst.msk [vmem:[#allocation2 + $0x68] sm:$0xf] %vm344_vm0, %v2906_v26  ;;  %v711_v36 = vadd.f32 %v3050_v27, %v3984_v58  ;;  %v4191_v16 = vld [vmem:[%s4948_s3 + $0xf8] sm:$0xff]  }
 0x126   :  { %v3098_v37 = vpop.f32.mrb[25].mxu1  ;;  %v746_v40 = vmul.f32 0.2, %v708_v31  ;;  %3157 = vmatprep.subr.bf16.mxu1 %v4191_v16 }
 0x127   :  { %v3099_v42 = vadd.f32 %v3098_v37, %v3097_v34  ;;  %v3100_v44 = vpop.f32.mrb[26].mxu1  ;;  %v2927_v45 = vpack.c.bf16 %v960_v35, %v960_v35  ;;  %v961_v46 = vmax.f32 %v915_v24, %v951_v33  ;;  %v747_v47 = vmul.f32 0.2, %v711_v36  ;;  %v3051_v49 = vpop.f32.mrb[24].mxu0  ;;  %3158 = vmatpush3.bf16.msra.mxu1 %v4200_v17 }
 0x128   :  { %v3101_v53 = vpop.f32.mrb[27].mxu1  ;;  %v756_v54 = vmax.f32 %v708_v31, %v746_v40  ;;  %v3052_v55 = vpop.f32.mrb[25].mxu0  ;;  %v535_v24 = vmax.f32 %v4075_v43, %v4095_v59  ;;  %v510_v37 = vadd.f32 %v4058_v23, %v3984_v58  ;;  %v4219_v23 = vld [vmem:[%s4948_s3 + $0x1c0] sm:$0xff]  }
 0x129   :  { %v920_v56 = vadd.f32 %v3099_v42, %v3984_v58  ;;  %980 = vrot.lane.b32.xlu1 %v2927_v45, %s3688_s21  ;;  %v3102_v60 = vadd.f32 %v3101_v53, %v3100_v44  ;;  %v757_v2 = vmax.f32 %v711_v36, %v747_v47  ;;  %v3054_v3 = vpop.f32.mrb[26].mxu0  ;;  %v2928_v4 = vpack.c.bf16 %v961_v46, %v961_v46 }
 0x12a   :  { %v2917_v5 = vpack.c.bf16 %v756_v54, %v756_v54  ;;  %v3053_v6 = vadd.f32 %v3052_v55, %v3051_v49  ;;  %v3055_v7 = vpop.f32.mrb[27].mxu0  ;;  %v527_v36 = vmul.f32 0.2, %v507_v38  ;;  %v536_v47 = vmax.f32 %v4082_v28, %v4115_v0  ;;  %3187 = vmatprep.subr.bf16.mxu1 %v4219_v23 }
 0x12b   :  { %v952_v8 = vmul.f32 0.2, %v920_v56  ;;  %v923_v10 = vadd.f32 %v3102_v60, %v3984_v58  ;;  %v2918_v11 = vpack.c.bf16 %v757_v2, %v757_v2  ;;  %v3056_v12 = vadd.f32 %v3055_v7, %v3054_v3 }
 0x12c   :  { %778 = vst.msk [vmem:[#allocation2 + $0x4] sm:$0xf] %vm344_vm0, %v2917_v5  ;;  %v716_v50 = vadd.f32 %v3053_v6, %v3984_v58  ;;  %v2911_v1 = vpack.c.bf16 %v535_v24, %v535_v24  ;;  %v528_v3 = vmul.f32 0.2, %v510_v37  ;;  %v515_v0 = vadd.f32 %v4071_v39, %v3984_v58 }
 0x12d   :  { %v953_v18 = vmul.f32 0.2, %v923_v10  ;;  %v3103_v19 = vpop.f32.mrb[28].mxu1  ;;  %982 = vrot.lane.b32.xlu1 %v2928_v4, %s3688_s21  ;;  %v962_v20 = vmax.f32 %v920_v56, %v952_v8  ;;  %779 = vst.msk [vmem:[#allocation2 + $0xc] sm:$0xf] %vm344_vm0, %v2918_v11  ;;  %v719_v21 = vadd.f32 %v3056_v12, %v3984_v58  ;;  %v2912_v11 = vpack.c.bf16 %v536_v47, %v536_v47 }
 0x12e   :  { %v3104_v14 = vpop.f32.mrb[29].mxu1  ;;  %v748_v25 = vmul.f32 0.2, %v716_v50  ;;  %v537_v12 = vmax.f32 %v507_v38, %v527_v36 }
 0x12f   :  { %v3105_v26 = vadd.f32 %v3104_v14, %v3103_v19  ;;  %v3106_v27 = vpop.f32.mrb[30].mxu1  ;;  %v2929_v31 = vpack.c.bf16 %v962_v20, %v962_v20  ;;  %v963_v33 = vmax.f32 %v923_v10, %v953_v18  ;;  %v749_v34 = vmul.f32 0.2, %v719_v21  ;;  %v3057_v35 = vpop.f32.mrb[28].mxu0 }
 0x130   :  { %v3107_v40 = vpop.f32.mrb[31].mxu1  ;;  %v758_v42 = vmax.f32 %v716_v50, %v748_v25  ;;  %v3058_v44 = vpop.f32.mrb[29].mxu0 }
 0x131   :  { %v928_v45 = vadd.f32 %v3105_v26, %v3984_v58  ;;  %567 = vrot.lane.b32.xlu1 %v2910_v22, %s3688_s21  ;;  %993 = vrot.lane.b32.xlu0 %v2929_v31, %s3688_s21  ;;  %v3108_v43 = vadd.f32 %v3107_v40, %v3106_v27  ;;  %v2930_v59 = vpack.c.bf16 %v963_v33, %v963_v33  ;;  %v3060_v46 = vpop.f32.mrb[30].mxu0  ;;  %v529_v27 = vmul.f32 0.2, %v515_v0 }
 0x132   :  { %v2919_v49 = vpack.c.bf16 %v758_v42, %v758_v42  ;;  %v759_v53 = vmax.f32 %v719_v21, %v749_v34  ;;  %v3059_v54 = vadd.f32 %v3058_v44, %v3057_v35  ;;  %v3061_v55 = vpop.f32.mrb[31].mxu0  ;;  %v518_v22 = vadd.f32 %v4084_v48, %v3984_v58 }
 0x133   :  { %v954_v56 = vmul.f32 0.2, %v928_v45  ;;  %v931_v60 = vadd.f32 %v3108_v43, %v3984_v58  ;;  %v3062_v2 = vadd.f32 %v3061_v55, %v3060_v46  ;;  %v538_v35 = vmax.f32 %v510_v37, %v528_v3 }
 0x134   :  { %787 = vst.msk [vmem:[#allocation2 + $0x1c] sm:$0xf] %vm344_vm0, %v2919_v49  ;;  %v2920_v4 = vpack.c.bf16 %v759_v53, %v759_v53  ;;  %v724_v28 = vadd.f32 %v3059_v54, %v3984_v58  ;;  %v2913_v43 = vpack.c.bf16 %v537_v12, %v537_v12  ;;  %v530_v46 = vmul.f32 0.2, %v518_v22 }
 0x135   :  { %v955_v5 = vmul.f32 0.2, %v931_v60  ;;  %v3109_v6 = vpop.f32.mrb[32].mxu1  ;;  %995 = vrot.lane.b32.xlu1 %v2930_v59, %s3688_s21  ;;  %578 = vrot.lane.b32.xlu0 %v2911_v1, %s3688_s21  ;;  %v964_v7 = vmax.f32 %v928_v45, %v954_v56  ;;  %v727_v8 = vadd.f32 %v3062_v2, %v3984_v58  ;;  %v539_v1 = vmax.f32 %v515_v0, %v529_v27 }
 0x136   :  { %v3110_v10 = vpop.f32.mrb[33].mxu1  ;;  %788 = vst.msk [vmem:[#allocation2 + $0x24] sm:$0xf] %vm344_vm0, %v2920_v4  ;;  %v750_v50 = vmul.f32 0.2, %v724_v28 }
 0x137   :  { %v3111_v18 = vadd.f32 %v3110_v10, %v3109_v6  ;;  %v3112_v19 = vpop.f32.mrb[34].mxu1  ;;  %v2931_v20 = vpack.c.bf16 %v964_v7, %v964_v7  ;;  %v965_v21 = vmax.f32 %v931_v60, %v955_v5  ;;  %v751_v39 = vmul.f32 0.2, %v727_v8  ;;  %v3063_v14 = vpop.f32.mrb[32].mxu0 }
 0x138   :  { %v3113_v24 = vpop.f32.mrb[35].mxu1  ;;  %v760_v25 = vmax.f32 %v724_v28, %v750_v50  ;;  %v3064_v26 = vpop.f32.mrb[33].mxu0  ;;  %v2914_v60 = vpack.c.bf16 %v538_v35, %v538_v35 }
 0x139   :  { %v936_v31 = vadd.f32 %v3111_v18, %v3984_v58  ;;  %580 = vrot.lane.b32.xlu1 %v2912_v11, %s3688_s21  ;;  %1006 = vrot.lane.b32.xlu0 %v2931_v20, %s3688_s21  ;;  %v3114_v38 = vadd.f32 %v3113_v24, %v3112_v19  ;;  %v2932_v33 = vpack.c.bf16 %v965_v21, %v965_v21  ;;  %v3066_v34 = vpop.f32.mrb[34].mxu0 }
 0x13a   :  { %v2921_v36 = vpack.c.bf16 %v760_v25, %v760_v25  ;;  %v761_v40 = vmax.f32 %v727_v8, %v751_v39  ;;  %v3065_v42 = vadd.f32 %v3064_v26, %v3063_v14  ;;  %v3067_v44 = vpop.f32.mrb[35].mxu0  ;;  %v2915_v19 = vpack.c.bf16 %v539_v1, %v539_v1 }
 0x13b   :  { %v956_v45 = vmul.f32 0.2, %v936_v31  ;;  %v939_v48 = vadd.f32 %v3114_v38, %v3984_v58  ;;  %v3068_v59 = vadd.f32 %v3067_v44, %v3066_v34  ;;  %v540_v26 = vmax.f32 %v518_v22, %v530_v46 }
 0x13c   :  { %796 = vst.msk [vmem:[#allocation2 + $0x34] sm:$0xf] %vm344_vm0, %v2921_v36  ;;  %v2922_v47 = vpack.c.bf16 %v761_v40, %v761_v40  ;;  %v732_v49 = vadd.f32 %v3065_v42, %v3984_v58 }
 0x13d   :  { %v957_v53 = vmul.f32 0.2, %v939_v48  ;;  %v3115_v54 = vpop.f32.mrb[36].mxu1  ;;  %1008 = vrot.lane.b32.xlu1 %v2932_v33, %s3688_s21  ;;  %591 = vrot.lane.b32.xlu0 %v2913_v43, %s3688_s21  ;;  %v966_v37 = vmax.f32 %v936_v31, %v956_v45  ;;  %v735_v55 = vadd.f32 %v3068_v59, %v3984_v58  ;;  %v2916_v40 = vpack.c.bf16 %v540_v26, %v540_v26  ;;  %v4293_v26 = vld [vmem:[%s4948_s3 + $0x150] sm:$0xff]  }
 0x13e   :  { %v3116_v56 = vpop.f32.mrb[37].mxu1  ;;  %797 = vst.msk [vmem:[#allocation2 + $0x3c] sm:$0xf] %vm344_vm0, %v2922_v47  ;;  %v752_v2 = vmul.f32 0.2, %v732_v49 }
 0x13f   :  { %v3117_v3 = vadd.f32 %v3116_v56, %v3115_v54  ;;  %v3118_v4 = vpop.f32.mrb[38].mxu1  ;;  %v2933_v28 = vpack.c.bf16 %v966_v37, %v966_v37  ;;  %v967_v5 = vmax.f32 %v939_v48, %v957_v53  ;;  %v753_v6 = vmul.f32 0.2, %v735_v55  ;;  %v3069_v7 = vpop.f32.mrb[36].mxu0  ;;  %v1171_v37 = vld [vmem:[#allocation2 + $0x10] sm:$0x11] }
 0x140   :  { %v3119_v8 = vpop.f32.mrb[39].mxu1  ;;  %v762_v10 = vmax.f32 %v732_v49, %v752_v2  ;;  %v3070_v11 = vpop.f32.mrb[37].mxu0  ;;  %v2800_v56 = vcombine.high %v1171_v37, %v1171_v37  ;;  %v4268_v2 = vld [vmem:[%s4948_s3 + $0x100] sm:$0xff]  }
 0x141   :  { %v944_v12 = vadd.f32 %v3117_v3, %v3984_v58  ;;  %593 = vrot.lane.b32.xlu1 %v2914_v60, %s3688_s21  ;;  %1019 = vrot.lane.b32.xlu0 %v2933_v28, %s3688_s21  ;;  %v3120_v50 = vadd.f32 %v3119_v8, %v3118_v4  ;;  %v2934_v0 = vpack.c.bf16 %v967_v5, %v967_v5  ;;  %v3072_v18 = vpop.f32.mrb[38].mxu0  ;;  %v4270_v28 = vld [vmem:[#allocation2 + $0x28] sm:$0x11] }
 0x142   :  { %v2923_v20 = vpack.c.bf16 %v762_v10, %v762_v10  ;;  %v763_v21 = vmax.f32 %v735_v55, %v753_v6  ;;  %v3071_v39 = vadd.f32 %v3070_v11, %v3069_v7  ;;  %v3073_v14 = vpop.f32.mrb[39].mxu0  ;;  %v2799_v55 = vcombine.low %v1171_v37, %v1171_v37  ;;  %4977 = vst [vmem:[#allocation5_spill] sm:$0xff] %v4268_v2  ;;  %v4277_v10 = vld [vmem:[%s4948_s3 + $0x148] sm:$0xff]   ;;  %v4350_v37 = vld [vmem:[%s4948_s3 + $0x160] sm:$0xff]  }
 0x143   :  { %v958_v24 = vmul.f32 0.2, %v944_v12  ;;  %v947_v25 = vadd.f32 %v3120_v50, %v3984_v58  ;;  %v3074_v27 = vadd.f32 %v3073_v14, %v3072_v18  ;;  %v1211_v4 = vshll.u32 %v2800_v56, 16  ;;  %v4285_v14 = vld [vmem:[%s4948_s3 + $0x108] sm:$0xff]   ;;  %v4358_v56 = vld [vmem:[%s4948_s3 + $0x190] sm:$0xff]  }
 0x144   :  { %805 = vst.msk [vmem:[#allocation2 + $0x4c] sm:$0xf] %vm344_vm0, %v2923_v20  ;;  %v2924_v31 = vpack.c.bf16 %v763_v21, %v763_v21  ;;  %v740_v38 = vadd.f32 %v3071_v39, %v3984_v58  ;;  %v1199_v3 = vshll.u32 %v2799_v55, 16  ;;  %v2804_v18 = vcombine.high %v4270_v28, %v4270_v28 }
 0x145   :  { %v959_v33 = vmul.f32 0.2, %v947_v25  ;;  %1021 = vrot.lane.b32.xlu1 %v2934_v0, %s3688_s21  ;;  %604 = vrot.lane.b32.xlu0 %v2915_v19, %s3688_s21  ;;  %v968_v34 = vmax.f32 %v944_v12, %v958_v24  ;;  %v743_v35 = vadd.f32 %v3074_v27, %v3984_v58  ;;  %v1213_v50 = vrot.slane %v1211_v4, 1  ;;  %v4367_v4 = vld [vmem:[%s4948_s3 + $0x120] sm:$0xff]  }
 0x146   :  { %806 = vst.msk [vmem:[#allocation2 + $0x54] sm:$0xf] %vm344_vm0, %v2924_v31  ;;  %v754_v36 = vmul.f32 0.2, %v740_v38  ;;  %v1201_v0 = vrot.slane %v1199_v3, 1 }
 0x147   :  { %v2935_v42 = vpack.c.bf16 %v968_v34, %v968_v34  ;;  %v969_v22 = vmax.f32 %v947_v25, %v959_v33  ;;  %v755_v44 = vmul.f32 0.2, %v743_v35  ;;  %v4303_v33 = vld [vmem:[%s4948_s3 + $0x110] sm:$0xff]  }
 0x148   :  { %v764_v45 = vmax.f32 %v740_v38, %v754_v36  ;;  %v4298_v38 = vld [vmem:[%s4948_s3 + $0x180] sm:$0xff]  }
 0x149   :  { %606 = vrot.lane.b32.xlu1 %v2916_v40, %s3688_s21  ;;  %1032 = vrot.lane.b32.xlu0 %v2935_v42, %s3688_s21  ;;  %v2936_v48 = vpack.c.bf16 %v969_v22, %v969_v22  ;;  %v765_v43 = vmax.f32 %v743_v35, %v755_v44  ;;  %v4313_v22 = vld [vmem:[%s4948_s3 + $0x1c8] sm:$0xff]   ;;  %v1252_v44 = vshll.u32 %v2804_v18, 16  ;;  %v4412_v18 = vld [vmem:[%s4948_s3 + $0x1a0] sm:$0xff]  }
 0x14a   :  { %v2925_v59 = vpack.c.bf16 %v764_v45, %v764_v45  ;;  %v4321_v45 = vld [vmem:[%s4948_s3 + $0x158] sm:$0xff]  }
 0x14b   :  { %v2926_v46 = vpack.c.bf16 %v765_v43, %v765_v43  ;;  %v4329_v43 = vld [vmem:[%s4948_s3 + $0x188] sm:$0xff]  }
 0x14c   :  { %814 = vst.msk [vmem:[#allocation2 + $0x64] sm:$0xf] %vm344_vm0, %v2925_v59 }
 0x14d   :  { %1034 = vrot.lane.b32.xlu1 %v2936_v48, %s3688_s21  ;;  %815 = vst.msk [vmem:[#allocation2 + $0x6c] sm:$0xf] %vm344_vm0, %v2926_v46 }
 0x173   :  { %v552_v58 = vpop.permute.xlu0 %551 }
 0x174   :  { %558 = vst.msk [vmem:[#allocation2] sm:$0xf] %vm557_vm1, %v552_v58  ;;  %v4336_v58 = vld [vmem:[%s4948_s3 + $0x118] sm:$0xff]  }
 0x177   :  { %v554_v47 = vpop.permute.xlu0 %553 }
 0x178   :  { %559 = vst.msk [vmem:[#allocation2 + $0x8] sm:$0xf] %vm557_vm1, %v554_v47  ;;  %v4341_v47 = vld [vmem:[%s4948_s3 + $0x1d0] sm:$0xff]  }
 0x17b   :  { %v566_v49 = vpop.permute.xlu0 %565 }
 0x17c   :  { %571 = vst.msk [vmem:[#allocation2 + $0x18] sm:$0xf] %vm557_vm1, %v566_v49 }
 0x17f   :  { %v3581_v7 = vld [vmem:[#allocation2] ss:$8 sps:$4 sm:$0xff]  }
 0x180   :  { %v1194_v11 = vshll.u32 %v3581_v7, 16  ;;  %v1192_v19 = vshrl.u32 %v3581_v7, 16 }
 0x182   :  { %v1196_v20 = vrot.slane %v1194_v11, 1 }
 0x184   :  { %v1197_v31 = vor.u32 %v1196_v20, %v1192_v19  ;;  %v4419_v20 = vld [vmem:[%s4948_s3 + $0x130] sm:$0xff]  }
 0x186   :  { %v1202_v40 = vsel %vm1190_vm2, %v1197_v31, %v1201_v0  ;;  %v4406_v0 = vld [vmem:[%s4948_s3 + $0x170] sm:$0xff]   ;;  %v4448_v31 = vld [vmem:[%s4948_s3 + $0x138] sm:$0xff]  }
 0x19b   :  { %v981_v53 = vpop.permute.xlu1 %980 }
 0x19c   :  { %986 = vst.msk [vmem:[#allocation2 + $0x4] sm:$0xf] %vm557_vm1, %v981_v53 }
 0x19f   :  { %v983_v54 = vpop.permute.xlu1 %982 }
 0x1a0   :  { %987 = vst.msk [vmem:[#allocation2 + $0xc] sm:$0xf] %vm557_vm1, %v983_v54  ;;  %v1254_v54 = vrot.slane %v1252_v44, 1  ;;  %v4465_v44 = vld [vmem:[%s4948_s3 + $0x1b0] sm:$0xff]  }
 0x1a3   :  { %v568_v60 = vpop.permute.xlu1 %567  ;;  %v994_v1 = vpop.permute.xlu0 %993 }
 0x1a4   :  { %572 = vst.msk [vmem:[#allocation2 + $0x20] sm:$0xf] %vm557_vm1, %v568_v60  ;;  %999 = vst.msk [vmem:[#allocation2 + $0x1c] sm:$0xf] %vm557_vm1, %v994_v1 }
 0x1a7   :  { %v996_v5 = vpop.permute.xlu1 %995  ;;  %v579_v6 = vpop.permute.xlu0 %578  ;;  %v3583_v8 = vld [vmem:[#allocation2 + $0x4] ss:$8 sps:$4 sm:$0xff]  }
 0x1a8   :  { %1000 = vst.msk [vmem:[#allocation2 + $0x24] sm:$0xf] %vm557_vm1, %v996_v5  ;;  %584 = vst.msk [vmem:[#allocation2 + $0x30] sm:$0xf] %vm557_vm1, %v579_v6  ;;  %v1206_v12 = vshll.u32 %v3583_v8, 16  ;;  %1680 = vmatprep.mubr.bf16.mxu0 %v3583_v8  ;;  %v1204_v24 = vshrl.u32 %v3583_v8, 16 }
 0x1a9   :  { %1681 = vmatmul.mubr.bf16.vlgmr.msra.gmra.mrb[40].mxu0 %v3581_v7  ;;  %v4372_v5 = vld [vmem:[%s4948_s3 + $0x1d8] sm:$0xff]   ;;  %v4380_v6 = vld [vmem:[%s4948_s3 + $0x168] sm:$0xff]  }
 0x1aa   :  { %3166 = vmatpush3.bf16.msra.mxu0 %v4268_v2  ;;  %v1208_v25 = vrot.slane %v1206_v12, 1  ;;  %v4386_v7 = vld [vmem:[%s4948_s3 + $0x198] sm:$0xff]   ;;  %v4393_v12 = vld [vmem:[%s4948_s3 + $0x128] sm:$0xff]  }
 0x1ab   :  { %v581_v21 = vpop.permute.xlu1 %580  ;;  %v1007_v39 = vpop.permute.xlu0 %1006  ;;  %3167 = vmatprep.subr.bf16.mxu0 %v4277_v10 }
 0x1ac   :  { %585 = vst.msk [vmem:[#allocation2 + $0x38] sm:$0xf] %vm557_vm1, %v581_v21  ;;  %1012 = vst.msk [vmem:[#allocation2 + $0x34] sm:$0xf] %vm557_vm1, %v1007_v39  ;;  %v1209_v27 = vor.u32 %v1208_v25, %v1204_v24  ;;  %v4424_v21 = vld [vmem:[%s4948_s3 + $0x1e8] sm:$0xff]   ;;  %v4433_v24 = vld [vmem:[%s4948_s3 + $0x178] sm:$0xff]  }
 0x1ad   :  { %v4426_v39 = vld [vmem:[#allocation2 + $0x18] ss:$8 sps:$4 sm:$0xff]   ;;  %v4439_v25 = vld [vmem:[%s4948_s3 + $0x1a8] sm:$0xff]  }
 0x1ae   :  { %3168 = vmatpush3.bf16.msra.mxu0 %v4285_v14  ;;  %v1214_v36 = vsel %vm1190_vm2, %v1209_v27, %v1213_v50  ;;  %v4398_v50 = vld [vmem:[%s4948_s3 + $0x1e0] sm:$0xff]   ;;  %v4441_v27 = vld [vmem:[#allocation2 + $0x28] sm:$0x11] }
 0x1af   :  { %v1009_v34 = vpop.permute.xlu1 %1008  ;;  %v592_v35 = vpop.permute.xlu0 %591  ;;  %v4308_v42 = vld [vmem:[#allocation2 + $0x1c] ss:$8 sps:$4 sm:$0xff]   ;;  %1721 = vmatprep.mubr.bf16.mxu1 %v1214_v36  ;;  %3169 = vmatprep.subr.bf16.mxu0 %v4293_v26  ;;  %v1235_v36 = vshll.u32 %v4426_v39, 16 }
 0x1b0   :  { %1013 = vst.msk [vmem:[#allocation2 + $0x3c] sm:$0xf] %vm557_vm1, %v1009_v34  ;;  %597 = vst.msk [vmem:[#allocation2 + $0x48] sm:$0xf] %vm557_vm1, %v592_v35  ;;  %1722 = vmatmul.mubr.bf16.vlgmr.msra.gmra.mrb[40].mxu1 %v1202_v40  ;;  %v1247_v48 = vshll.u32 %v4308_v42, 16  ;;  %1762 = vmatprep.mubr.bf16.mxu0 %v4308_v42  ;;  %v1245_v49 = vshrl.u32 %v4308_v42, 16  ;;  %v2803_v35 = vcombine.low %v4270_v28, %v4270_v28 }
 0x1b1   :  { %3188 = vmatpush3.bf16.msra.mxu1 %v4298_v38  ;;  %v4453_v34 = vld [vmem:[%s4948_s3 + $0x1f0] sm:$0xff]   ;;  %v2873_v40 = vcombine.high %v4441_v27, %v4441_v27  ;;  %v4472_v28 = vld [vmem:[%s4948_s3 + $0x40] sm:$0xff]  }
 0x1b2   :  { %3170 = vmatpush3.bf16.msra.mxu0 %v4303_v33  ;;  %3189 = vmatprep.subr.bf16.mxu1 %v4313_v22  ;;  %v1249_v53 = vrot.slane %v1247_v48, 1  ;;  %4978 = vst [vmem:[#allocation6_spill] sm:$0xff] %v4453_v34  ;;  %v4478_v48 = vld [vmem:[%s4948_s3 + $0x1f8] sm:$0xff]  }
 0x1b3   :  { %v594_v59 = vpop.permute.xlu1 %593  ;;  %v1020_v46 = vpop.permute.xlu0 %1019  ;;  %3171 = vmatprep.subr.bf16.mxu0 %v4321_v45 }
 0x1b4   :  { %598 = vst.msk [vmem:[#allocation2 + $0x50] sm:$0xf] %vm557_vm1, %v594_v59  ;;  %1025 = vst.msk [vmem:[#allocation2 + $0x4c] sm:$0xf] %vm557_vm1, %v1020_v46  ;;  %v4352_v55 = vor.u32 %v1249_v53, %v1245_v49  ;;  %v1237_v59 = vrot.slane %v1235_v36, 1  ;;  %v1240_v46 = vshll.u32 %v2803_v35, 16 }
 0x1b5   :  { %3190 = vmatpush3.bf16.msra.mxu1 %v4329_v43  ;;  %v1859_v49 = vshll.u32 %v2873_v40, 16  ;;  %v4485_v53 = vld [vmem:[%s4948_s3 + $0x1b8] sm:$0xff]   ;;  %v4522_v36 = vld [vmem:[%s4948_s3 + $0x50] sm:$0xff]  }
 0x1b6   :  { %3172 = vmatpush3.bf16.msra.mxu0 %v4336_v58  ;;  %3191 = vmatprep.subr.bf16.mxu1 %v4341_v47  ;;  %v1255_v3 = vsel %vm1190_vm2, %v4352_v55, %v1254_v54  ;;  %v1233_v54 = vshrl.u32 %v4426_v39, 16 }
 0x1b7   :  { %v1022_v60 = vpop.permute.xlu1 %1021  ;;  %v605_v1 = vpop.permute.xlu0 %604  ;;  %1803 = vmatprep.mubr.bf16.mxu1 %v1255_v3  ;;  %3173 = vmatprep.subr.bf16.mxu0 %v4350_v37 }
 0x1b8   :  { %1026 = vst.msk [vmem:[#allocation2 + $0x54] sm:$0xf] %vm557_vm1, %v1022_v60  ;;  %610 = vst.msk [vmem:[#allocation2 + $0x60] sm:$0xf] %vm557_vm1, %v605_v1  ;;  %v4491_v60 = vld [vmem:[%s4948_s3] sm:$0xff]   ;;  %v4499_v1 = vld [vmem:[%s4948_s3 + $0x48] sm:$0xff]   ;;  %v4502_v3 = vor.u32 %v1237_v59, %v1233_v54 }
 0x1b9   :  { %3192 = vmatpush3.bf16.msra.mxu1 %v4358_v56  ;;  %v4530_v59 = vld [vmem:[%s4948_s3 + $0x80] sm:$0xff]   ;;  %v4554_v54 = vld [vmem:[%s4948_s3 + $0x88] sm:$0xff]  }
 0x1ba   :  { %3174 = vmatpush3.bf16.msra.mxu0 %v4367_v4  ;;  %3193 = vmatprep.subr.bf16.mxu1 %v4372_v5 }
 0x1bb   :  { %v607_v8 = vpop.permute.xlu1 %606  ;;  %v1033_v11 = vpop.permute.xlu0 %1032  ;;  %3175 = vmatprep.subr.bf16.mxu0 %v4380_v6 }
 0x1bc   :  { %611 = vst.msk [vmem:[#allocation2 + $0x68] sm:$0xf] %vm557_vm1, %v607_v8  ;;  %1038 = vst.msk [vmem:[#allocation2 + $0x64] sm:$0xf] %vm557_vm1, %v1033_v11  ;;  %v1242_v8 = vrot.slane %v1240_v46, 1  ;;  %v1861_v11 = vrot.slane %v1859_v49, 1 }
 0x1bd   :  { %3194 = vmatpush3.bf16.msra.mxu1 %v4386_v7  ;;  %v4536_v46 = vld [vmem:[%s4948_s3 + $0x10] sm:$0xff]   ;;  %v4542_v49 = vld [vmem:[%s4948_s3 + $0xc8] sm:$0xff]  }
 0x1be   :  { %3176 = vmatpush3.bf16.msra.mxu0 %v4393_v12  ;;  %3195 = vmatprep.subr.bf16.mxu1 %v4398_v50  ;;  %v1243_v35 = vsel %vm1190_vm2, %v4502_v3, %v1242_v8  ;;  %v1862_v40 = vsel %vm1190_vm2, %v4352_v55, %v1861_v11  ;;  %v4548_v55 = vld [vmem:[%s4948_s3 + $0x58] sm:$0xff]   ;;  %v4566_v11 = vld [vmem:[%s4948_s3 + $0xd0] sm:$0xff]  }
 0x1bf   :  { %v1035_v19 = vpop.permute.xlu1 %1034  ;;  %3177 = vmatprep.subr.bf16.mxu0 %v4406_v0  ;;  %v4560_v8 = vld [vmem:[%s4948_s3 + $0x18] sm:$0xff]   ;;  %4980 = vst [vmem:[#allocation8_spill] sm:$0xff] %v4566_v11 }
 0x1c0   :  { %1039 = vst.msk [vmem:[#allocation2 + $0x6c] sm:$0xf] %vm557_vm1, %v1035_v19  ;;  %v4508_v19 = vld [vmem:[%s4948_s3 + $0x8] sm:$0xff]   ;;  %4979 = vst [vmem:[#allocation7_spill] sm:$0xff] %v4560_v8 }
 0x1c1   :  { %3196 = vmatpush3.bf16.msra.mxu1 %v4412_v18 }
 0x1c2   :  { %3178 = vmatpush3.bf16.msra.mxu0 %v4419_v20  ;;  %3197 = vmatprep.subr.bf16.mxu1 %v4424_v21 }
 0x1c3   :  { %3179 = vmatprep.subr.bf16.mxu0 %v4433_v24 }
 0x1c5   :  { %3198 = vmatpush3.bf16.msra.mxu1 %v4439_v25 }
 0x1c6   :  { %3180 = vmatpush3.bf16.msra.mxu0 %v4448_v31  ;;  %3199 = vmatprep.subr.bf16.mxu1 %v4453_v34 }
 0x1c7   :  { %3209 = vmatprep.subr.bf16.mxu0 %v4472_v28 }
 0x1c9   :  { %1763 = vmatmul.mubr.bf16.vlgmr.msra.gmra.mrb[44].mxu0 %v4426_v39  ;;  %3200 = vmatpush3.bf16.msra.mxu1 %v4465_v44 }
 0x1ca   :  { %3210 = vmatpush3.bf16.msra.mxu0 %v4491_v60  ;;  %1938 = vmatprep.mubr.bf16.mxu0 %v4308_v42  ;;  %v4514_v42 = vld [vmem:[%s4948_s3 + $0xc0] sm:$0xff]  }
 0x1cb   :  { %3201 = vmatprep.subr.bf16.mxu1 %v4478_v48  ;;  %3211 = vmatprep.subr.bf16.mxu0 %v4499_v1 }
 0x1cd   :  { %3202 = vmatpush3.bf16.msra.mxu1 %v4485_v53 }
 0x1ce   :  { %3212 = vmatpush3.bf16.msra.mxu0 %v4508_v19  ;;  %3231 = vmatprep.subr.bf16.mxu1 %v4514_v42 }
 0x1cf   :  { %3213 = vmatprep.subr.bf16.mxu0 %v4522_v36 }
 0x1d0   :  { %1804 = vmatmul.mubr.bf16.vlgmr.msra.gmra.mrb[44].mxu1 %v1243_v35  ;;  %v4572_v35 = vld [vmem:[%s4948_s3 + $0x60] sm:$0xff]  }
 0x1d1   :  { %3232 = vmatpush3.bf16.msra.mxu1 %v4530_v59  ;;  %1979 = vmatprep.mubr.bf16.mxu1 %v1862_v40  ;;  %v4578_v40 = vld [vmem:[%s4948_s3 + $0x90] sm:$0xff]  }
 0x1d2   :  { %3214 = vmatpush3.bf16.msra.mxu0 %v4536_v46  ;;  %3233 = vmatprep.subr.bf16.mxu1 %v4542_v49  ;;  %4981 = vst [vmem:[#allocation9_spill] sm:$0xff] %v4578_v40 }
 0x1d3   :  { %3215 = vmatprep.subr.bf16.mxu0 %v4548_v55 }
 0x1d5   :  { %3234 = vmatpush3.bf16.msra.mxu1 %v4554_v54 }
 0x1d6   :  { %3216 = vmatpush3.bf16.msra.mxu0 %v4560_v8  ;;  %3235 = vmatprep.subr.bf16.mxu1 %v4566_v11  ;;  %v4584_v8 = vld [vmem:[%s4948_s3 + $0x20] sm:$0xff]   ;;  %v4590_v11 = vld [vmem:[%s4948_s3 + $0xd8] sm:$0xff]  }
 0x1d7   :  { %3217 = vmatprep.subr.bf16.mxu0 %v4572_v35  ;;  %4982 = vst [vmem:[#allocation10_spill] sm:$0xff] %v4584_v8  ;;  %4983 = vst [vmem:[#allocation11_spill] sm:$0xff] %v4590_v11 }
 0x1d9   :  { %3236 = vmatpush3.bf16.msra.mxu1 %v4578_v40  ;;  %v4597_v40 = vld [vmem:[%s4948_s3 + $0x98] sm:$0xff]  }
 0x1da   :  { %3218 = vmatpush3.bf16.msra.mxu0 %v4584_v8  ;;  %3237 = vmatprep.subr.bf16.mxu1 %v4590_v11  ;;  %4984 = vst [vmem:[#allocation12_spill] sm:$0xff] %v4597_v40  ;;  %v4603_v8 = vld [vmem:[#allocation2 + $0x34] ss:$8 sps:$4 sm:$0xff]   ;;  %v1823_v11 = vld [vmem:[#allocation2 + $0x40] sm:$0x11] }
 0x1db   :  { %3219 = vmatprep.subr.bf16.mxu0 %v4092_v57  ;;  %v2872_v57 = vcombine.low %v4441_v27, %v4441_v27 }
 0x1dd   :  { %3238 = vmatpush3.bf16.msra.mxu1 %v4597_v40  ;;  %v2877_v40 = vcombine.high %v1823_v11, %v1823_v11 }
 0x1de   :  { %3220 = vmatpush3.bf16.msra.mxu0 %v4112_v63  ;;  %3239 = vmatprep.subr.bf16.mxu1 %v4102_v61  ;;  %v1895_v63 = vshll.u32 %v4603_v8, 16  ;;  %v1847_v61 = vshll.u32 %v2872_v57, 16 }
 0x1df   :  { %3221 = vmatprep.subr.bf16.mxu0 %v4126_v9  ;;  %v1900_v9 = vshll.u32 %v2877_v40, 16 }
 0x1e1   :  { %3240 = vmatpush3.bf16.msra.mxu1 %v4107_v62  ;;  %v1897_v62 = vrot.slane %v1895_v63, 1 }
 0x1e2   :  { %3222 = vmatpush3.bf16.msra.mxu0 %v4136_v15  ;;  %3241 = vmatprep.subr.bf16.mxu1 %v4131_v13  ;;  %v1893_v13 = vshrl.u32 %v4603_v8, 16  ;;  %v1849_v15 = vrot.slane %v1847_v61, 1 }
 0x1e3   :  { %3223 = vmatprep.subr.bf16.mxu0 %v4151_v30  ;;  %v1902_v30 = vrot.slane %v1900_v9, 1  ;;  %v4985_v9 = vld [vmem:[#allocation7_spill] sm:$0xff] }
 0x1e5   :  { %3242 = vmatpush3.bf16.msra.mxu1 %v4146_v29  ;;  %v1898_v29 = vor.u32 %v1897_v62, %v1893_v13  ;;  %v4986_v13 = vld [vmem:[#allocation8_spill] sm:$0xff] }
 0x1e6   :  { %3224 = vmatpush3.bf16.msra.mxu0 %v4158_v32  ;;  %3243 = vmatprep.subr.bf16.mxu1 %v4168_v41  ;;  %v1850_v32 = vsel %vm1190_vm2, %v4502_v3, %v1849_v15  ;;  %v4987_v15 = vld [vmem:[#allocation9_spill] sm:$0xff] }
 0x1e7   :  { %3253 = vmatprep.subr.bf16.mxu0 %v4178_v52  ;;  %v1903_v41 = vsel %vm1190_vm2, %v1898_v29, %v1902_v30  ;;  %v4649_v52 = vld [vmem:[#allocation2 + $0x40] sm:$0x11]  ;;  %v4989_v30 = vld [vmem:[#allocation11_spill] sm:$0xff] }
 0x1e9   :  { %1939 = vmatmul.mubr.bf16.vlgmr.msra.gmra.mrb[48].mxu0 %v4426_v39  ;;  %3244 = vmatpush3.bf16.msra.mxu1 %v4173_v51  ;;  %v4645_v51 = vld [vmem:[#allocation2 + $0x30] ss:$8 sps:$4 sm:$0xff]   ;;  %v2881_v39 = vcombine.high %v4649_v52, %v4649_v52 }
 0x1ea   :  { %3254 = vmatpush3.bf16.msra.mxu0 %v4268_v2  ;;  %2020 = vmatprep.mubr.bf16.mxu0 %v4603_v8 }
 0x1eb   :  { %3245 = vmatprep.subr.bf16.mxu1 %v4191_v16  ;;  %3255 = vmatprep.subr.bf16.mxu0 %v4277_v10  ;;  %v2876_v16 = vcombine.low %v1823_v11, %v1823_v11  ;;  %v2118_v40 = vshll.u32 %v2881_v39, 16  ;;  %v1881_v11 = vshrl.u32 %v4645_v51, 16  ;;  %v4710_v39 = vld [vmem:[%s4948_s3 + $0x70] sm:$0xff]  }
 0x1ec   :  { %4992 = vst [vmem:[#allocation8_spill] sm:$0xff] %v4710_v39 }
 0x1ed   :  { %3246 = vmatpush3.bf16.msra.mxu1 %v4200_v17  ;;  %v1883_v17 = vshll.u32 %v4645_v51, 16  ;;  %v1888_v3 = vshll.u32 %v2876_v16, 16  ;;  %v2120_v61 = vrot.slane %v2118_v40, 1  ;;  %v4698_v16 = vld [vmem:[%s4948_s3 + $0x28] sm:$0xff]   ;;  %v4721_v40 = vld [vmem:[#allocation2 + $0x58] sm:$0x11] }
 0x1ee   :  { %3256 = vmatpush3.bf16.msra.mxu0 %v4285_v14  ;;  %3275 = vmatprep.subr.bf16.mxu1 %v4219_v23 }
 0x1ef   :  { %3257 = vmatprep.subr.bf16.mxu0 %v4293_v26  ;;  %v1885_v27 = vrot.slane %v1883_v17, 1  ;;  %v1890_v63 = vrot.slane %v1888_v3, 1  ;;  %v4704_v17 = vld [vmem:[%s4948_s3 + $0xe0] sm:$0xff]  }
 0x1f0   :  { %1980 = vmatmul.mubr.bf16.vlgmr.msra.gmra.mrb[48].mxu1 %v1850_v32  ;;  %v4691_v32 = vld [vmem:[%s4948_s3 + $0x68] sm:$0xff]   ;;  %4991 = vst [vmem:[#allocation7_spill] sm:$0xff] %v4704_v17  ;;  %v4718_v3 = vld [vmem:[%s4948_s3 + $0xa0] sm:$0xff]  }
 0x1f1   :  { %3276 = vmatpush3.bf16.msra.mxu1 %v4298_v38  ;;  %2061 = vmatprep.mubr.bf16.mxu1 %v1903_v41  ;;  %v4668_v57 = vor.u32 %v1885_v27, %v1881_v11  ;;  %v4990_v41 = vld [vmem:[#allocation12_spill] sm:$0xff]  ;;  %4993 = vst [vmem:[#allocation9_spill] sm:$0xff] %v4718_v3 }
 0x1f2   :  { %3258 = vmatpush3.bf16.msra.mxu0 %v4303_v33  ;;  %3277 = vmatprep.subr.bf16.mxu1 %v4313_v22  ;;  %v4713_v27 = vld [vmem:[#allocation2 + $0x4c] ss:$8 sps:$4 sm:$0xff]  }
 0x1f3   :  { %3259 = vmatprep.subr.bf16.mxu0 %v4321_v45  ;;  %v1891_v62 = vsel %vm1190_vm2, %v4668_v57, %v1890_v63  ;;  %v4726_v11 = vld [vmem:[%s4948_s3 + $0x30] sm:$0xff]   ;;  %v4732_v63 = vld [vmem:[%s4948_s3 + $0xe8] sm:$0xff]  }
 0x1f4   :  { %4995 = vst [vmem:[#allocation11_spill] sm:$0xff] %v4732_v63 }
 0x1f5   :  { %3278 = vmatpush3.bf16.msra.mxu1 %v4329_v43 }
 0x1f6   :  { %3260 = vmatpush3.bf16.msra.mxu0 %v4336_v58  ;;  %3279 = vmatprep.subr.bf16.mxu1 %v4341_v47 }
 0x1f7   :  { %3261 = vmatprep.subr.bf16.mxu0 %v4350_v37 }
 0x1f9   :  { %3280 = vmatpush3.bf16.msra.mxu1 %v4358_v56 }
 0x1fa   :  { %3262 = vmatpush3.bf16.msra.mxu0 %v4367_v4  ;;  %3281 = vmatprep.subr.bf16.mxu1 %v4372_v5 }
 0x1fb   :  { %3263 = vmatprep.subr.bf16.mxu0 %v4380_v6 }
 0x1fd   :  { %3282 = vmatpush3.bf16.msra.mxu1 %v4386_v7 }
 0x1fe   :  { %3264 = vmatpush3.bf16.msra.mxu0 %v4393_v12  ;;  %3283 = vmatprep.subr.bf16.mxu1 %v4398_v50 }
 0x1ff   :  { %3265 = vmatprep.subr.bf16.mxu0 %v4406_v0 }
 0x201   :  { %3284 = vmatpush3.bf16.msra.mxu1 %v4412_v18 }
 0x202   :  { %3266 = vmatpush3.bf16.msra.mxu0 %v4419_v20  ;;  %3285 = vmatprep.subr.bf16.mxu1 %v4424_v21 }
 0x203   :  { %3267 = vmatprep.subr.bf16.mxu0 %v4433_v24 }
 0x205   :  { %3286 = vmatpush3.bf16.msra.mxu1 %v4439_v25 }
 0x206   :  { %3268 = vmatpush3.bf16.msra.mxu0 %v4448_v31  ;;  %3287 = vmatprep.subr.bf16.mxu1 %v4453_v34 }
 0x207   :  { %3297 = vmatprep.subr.bf16.mxu0 %v4472_v28 }
 0x209   :  { %2021 = vmatmul.mubr.bf16.vlgmr.msra.gmra.mrb[52].mxu0 %v4645_v51  ;;  %3288 = vmatpush3.bf16.msra.mxu1 %v4465_v44 }
 0x20a   :  { %3298 = vmatpush3.bf16.msra.mxu0 %v4491_v60  ;;  %2197 = vmatprep.mubr.bf16.mxu0 %v4603_v8  ;;  %v2121_v8 = vsel %vm1190_vm2, %v1898_v29, %v2120_v61  ;;  %v4988_v29 = vld [vmem:[#allocation10_spill] sm:$0xff]  ;;  %v4738_v61 = vld [vmem:[%s4948_s3 + $0x78] sm:$0xff]  }
 0x20b   :  { %3289 = vmatprep.subr.bf16.mxu1 %v4478_v48  ;;  %3299 = vmatprep.subr.bf16.mxu0 %v4499_v1  ;;  %4994 = vst [vmem:[#allocation10_spill] sm:$0xff] %v4726_v11  ;;  %4996 = vst [vmem:[#allocation12_spill] sm:$0xff] %v4738_v61 }
 0x20d   :  { %3290 = vmatpush3.bf16.msra.mxu1 %v4485_v53 }
 0x20e   :  { %3300 = vmatpush3.bf16.msra.mxu0 %v4508_v19  ;;  %3319 = vmatprep.subr.bf16.mxu1 %v4514_v42 }
 0x20f   :  { %3301 = vmatprep.subr.bf16.mxu0 %v4522_v36 }
 0x210   :  { %2062 = vmatmul.mubr.bf16.vlgmr.msra.gmra.mrb[52].mxu1 %v1891_v62  ;;  %v2880_v62 = vcombine.low %v4649_v52, %v4649_v52  ;;  %v4761_v52 = vld [vmem:[%s4948_s3 + $0xf0] sm:$0xff]  }
 0x211   :  { %3320 = vmatpush3.bf16.msra.mxu1 %v4530_v59  ;;  %2238 = vmatprep.mubr.bf16.mxu1 %v2121_v8  ;;  %v2154_v8 = vshll.u32 %v4713_v27, 16  ;;  %4999 = vst [vmem:[#allocation15_spill] sm:$0xff] %v4761_v52 }
 0x212   :  { %3302 = vmatpush3.bf16.msra.mxu0 %v4536_v46  ;;  %3321 = vmatprep.subr.bf16.mxu1 %v4542_v49 }
 0x213   :  { %3303 = vmatprep.subr.bf16.mxu0 %v4548_v55 }
 0x215   :  { %3322 = vmatpush3.bf16.msra.mxu1 %v4554_v54 }
 0x216   :  { %3304 = vmatpush3.bf16.msra.mxu0 %v4985_v9  ;;  %3323 = vmatprep.subr.bf16.mxu1 %v4986_v13 }
 0x217   :  { %3305 = vmatprep.subr.bf16.mxu0 %v4572_v35 }
 0x219   :  { %3324 = vmatpush3.bf16.msra.mxu1 %v4987_v15 }
 0x21a   :  { %3306 = vmatpush3.bf16.msra.mxu0 %v4988_v29  ;;  %3325 = vmatprep.subr.bf16.mxu1 %v4989_v30 }
 0x21b   :  { %3307 = vmatprep.subr.bf16.mxu0 %v4691_v32 }
 0x21d   :  { %3326 = vmatpush3.bf16.msra.mxu1 %v4990_v41 }
 0x21e   :  { %3308 = vmatpush3.bf16.msra.mxu0 %v4698_v16  ;;  %3327 = vmatprep.subr.bf16.mxu1 %v4704_v17 }
 0x21f   :  { %3309 = vmatprep.subr.bf16.mxu0 %v4710_v39  ;;  %v2156_v39 = vrot.slane %v2154_v8, 1 }
 0x221   :  { %3328 = vmatpush3.bf16.msra.mxu1 %v4718_v3  ;;  %v4749_v3 = vld [vmem:[%s4948_s3 + $0xa8] sm:$0xff]  }
 0x222   :  { %3310 = vmatpush3.bf16.msra.mxu0 %v4726_v11  ;;  %3329 = vmatprep.subr.bf16.mxu1 %v4732_v63  ;;  %v2885_v11 = vcombine.high %v4721_v40, %v4721_v40  ;;  %4997 = vst [vmem:[#allocation13_spill] sm:$0xff] %v4749_v3  ;;  %v4755_v63 = vld [vmem:[%s4948_s3 + $0x38] sm:$0xff]  }
 0x223   :  { %3311 = vmatprep.subr.bf16.mxu0 %v4738_v61  ;;  %4998 = vst [vmem:[#allocation14_spill] sm:$0xff] %v4755_v63  ;;  %v4767_v61 = vld [vmem:[%s4948_s3 + $0x140] sm:$0xff]  }
 0x224   :  { %v2159_v17 = vshll.u32 %v2885_v11, 16 }
 0x225   :  { %3330 = vmatpush3.bf16.msra.mxu1 %v4749_v3  ;;  %v2106_v3 = vshll.u32 %v2880_v62, 16  ;;  %v4783_v62 = vld [vmem:[%s4948_s3 + $0xf8] sm:$0xff]  }
 0x226   :  { %3312 = vmatpush3.bf16.msra.mxu0 %v4755_v63  ;;  %3331 = vmatprep.subr.bf16.mxu1 %v4761_v52  ;;  %v4774_v63 = vld [vmem:[%s4948_s3 + $0xb0] sm:$0xff]   ;;  %v2152_v52 = vshrl.u32 %v4713_v27, 16  ;;  %v2161_v8 = vrot.slane %v2159_v17, 1  ;;  %v2884_v17 = vcombine.low %v4721_v40, %v4721_v40 }
 0x227   :  { %3341 = vmatprep.subr.bf16.mxu0 %v4767_v61  ;;  %5000 = vst [vmem:[#allocation16_spill] sm:$0xff] %v4774_v63 }
 0x228   :  { %v2157_v11 = vor.u32 %v2156_v39, %v2152_v52 }
 0x229   :  { %2198 = vmatmul.mubr.bf16.vlgmr.msra.gmra.mrb[56].mxu0 %v4645_v51  ;;  %3332 = vmatpush3.bf16.msra.mxu1 %v4774_v63  ;;  %v2108_v51 = vrot.slane %v2106_v3, 1 }
 0x22a   :  { %3342 = vmatpush3.bf16.msra.mxu0 %v4268_v2  ;;  %2279 = vmatprep.mubr.bf16.mxu0 %v4713_v27  ;;  %v4790_v2 = vld [vmem:[%s4948_s3 + $0xb8] sm:$0xff]   ;;  %v2162_v39 = vsel %vm1190_vm2, %v2157_v11, %v2161_v8 }
 0x22b   :  { %3333 = vmatprep.subr.bf16.mxu1 %v4783_v62  ;;  %3343 = vmatprep.subr.bf16.mxu0 %v4277_v10  ;;  %v2109_v63 = vsel %vm1190_vm2, %v4668_v57, %v2108_v51  ;;  %v2338_v57 = vld [vmem:[#allocation2 + $0x58] sm:$0x11]  ;;  %v2147_v51 = vshll.u32 %v2884_v17, 16 }
 0x22d   :  { %3334 = vmatpush3.bf16.msra.mxu1 %v4790_v2 }
 0x22e   :  { %3344 = vmatpush3.bf16.msra.mxu0 %v4285_v14  ;;  %3363 = vmatprep.subr.bf16.mxu1 %v4219_v23  ;;  %v4814_v23 = vld [vmem:[#allocation2 + $0x48] ss:$8 sps:$4 sm:$0xff]  }
 0x22f   :  { %3345 = vmatprep.subr.bf16.mxu0 %v4293_v26  ;;  %v2142_v3 = vshll.u32 %v4814_v23, 16  ;;  %v2140_v40 = vshrl.u32 %v4814_v23, 16 }
 0x230   :  { %2239 = vmatmul.mubr.bf16.vlgmr.msra.gmra.mrb[56].mxu1 %v2109_v63  ;;  %v2889_v63 = vcombine.high %v2338_v57, %v2338_v57 }
 0x231   :  { %3364 = vmatpush3.bf16.msra.mxu1 %v4298_v38  ;;  %2320 = vmatprep.mubr.bf16.mxu1 %v2162_v39  ;;  %v2144_v52 = vrot.slane %v2142_v3, 1 }
 0x232   :  { %3346 = vmatpush3.bf16.msra.mxu0 %v4303_v33  ;;  %3365 = vmatprep.subr.bf16.mxu1 %v4313_v22  ;;  %v2377_v8 = vshll.u32 %v2889_v63, 16 }
 0x233   :  { %3347 = vmatprep.subr.bf16.mxu0 %v4321_v45  ;;  %v2145_v39 = vor.u32 %v2144_v52, %v2140_v40 }
 0x235   :  { %3366 = vmatpush3.bf16.msra.mxu1 %v4329_v43 }
 0x236   :  { %3348 = vmatpush3.bf16.msra.mxu0 %v4336_v58  ;;  %3367 = vmatprep.subr.bf16.mxu1 %v4341_v47 }
 0x237   :  { %3349 = vmatprep.subr.bf16.mxu0 %v4350_v37 }
 0x239   :  { %3368 = vmatpush3.bf16.msra.mxu1 %v4358_v56 }
 0x23a   :  { %3350 = vmatpush3.bf16.msra.mxu0 %v4367_v4  ;;  %3369 = vmatprep.subr.bf16.mxu1 %v4372_v5 }
 0x23b   :  { %3351 = vmatprep.subr.bf16.mxu0 %v4380_v6 }
 0x23d   :  { %3370 = vmatpush3.bf16.msra.mxu1 %v4386_v7 }
 0x23e   :  { %3352 = vmatpush3.bf16.msra.mxu0 %v4393_v12  ;;  %3371 = vmatprep.subr.bf16.mxu1 %v4398_v50 }
 0x23f   :  { %3353 = vmatprep.subr.bf16.mxu0 %v4406_v0 }
 0x241   :  { %3372 = vmatpush3.bf16.msra.mxu1 %v4412_v18 }
 0x242   :  { %3354 = vmatpush3.bf16.msra.mxu0 %v4419_v20  ;;  %3373 = vmatprep.subr.bf16.mxu1 %v4424_v21 }
 0x243   :  { %3355 = vmatprep.subr.bf16.mxu0 %v4433_v24 }
 0x245   :  { %3374 = vmatpush3.bf16.msra.mxu1 %v4439_v25 }
 0x246   :  { %3356 = vmatpush3.bf16.msra.mxu0 %v4448_v31  ;;  %3375 = vmatprep.subr.bf16.mxu1 %v4453_v34  ;;  %v2149_v34 = vrot.slane %v2147_v51, 1 }
 0x247   :  { %3385 = vmatprep.subr.bf16.mxu0 %v4472_v28  ;;  %v2379_v28 = vrot.slane %v2377_v8, 1 }
 0x248   :  { %v2150_v17 = vsel %vm1190_vm2, %v2145_v39, %v2149_v34  ;;  %v5001_v34 = vld [vmem:[#allocation7_spill] sm:$0xff] }
 0x249   :  { %2280 = vmatmul.mubr.bf16.vlgmr.msra.gmra.mrb[60].mxu0 %v4814_v23  ;;  %3376 = vmatpush3.bf16.msra.mxu1 %v4465_v44 }
 0x24a   :  { %3386 = vmatpush3.bf16.msra.mxu0 %v4491_v60  ;;  %2456 = vmatprep.mubr.bf16.mxu0 %v4713_v27  ;;  %v2380_v60 = vsel %vm1190_vm2, %v2157_v11, %v2379_v28 }
 0x24b   :  { %3377 = vmatprep.subr.bf16.mxu1 %v4478_v48  ;;  %3387 = vmatprep.subr.bf16.mxu0 %v4499_v1  ;;  %v5002_v1 = vld [vmem:[#allocation8_spill] sm:$0xff] }
 0x24d   :  { %3378 = vmatpush3.bf16.msra.mxu1 %v4485_v53 }
 0x24e   :  { %3388 = vmatpush3.bf16.msra.mxu0 %v4508_v19  ;;  %3407 = vmatprep.subr.bf16.mxu1 %v4514_v42  ;;  %v3641_v19 = vld [vmem:[#allocation2 + $0x64] ss:$8 sps:$4 sm:$0xff]   ;;  %v5003_v42 = vld [vmem:[#allocation9_spill] sm:$0xff] }
 0x24f   :  { %3389 = vmatprep.subr.bf16.mxu0 %v4522_v36  ;;  %v4858_v36 = vld [vmem:[#allocation2 + $0x70] sm:$0x11]  ;;  %v2411_v27 = vshrl.u32 %v3641_v19, 16 }
 0x250   :  { %2321 = vmatmul.mubr.bf16.vlgmr.msra.gmra.mrb[60].mxu1 %v2150_v17 }
 0x251   :  { %3408 = vmatpush3.bf16.msra.mxu1 %v4530_v59  ;;  %2497 = vmatprep.mubr.bf16.mxu1 %v2380_v60  ;;  %v5004_v59 = vld [vmem:[#allocation10_spill] sm:$0xff] }
 0x252   :  { %3390 = vmatpush3.bf16.msra.mxu0 %v4536_v46  ;;  %3409 = vmatprep.subr.bf16.mxu1 %v4542_v49  ;;  %v5005_v46 = vld [vmem:[#allocation11_spill] sm:$0xff]  ;;  %v5006_v49 = vld [vmem:[#allocation12_spill] sm:$0xff] }
 0x253   :  { %3391 = vmatprep.subr.bf16.mxu0 %v4548_v55  ;;  %v2888_v55 = vcombine.low %v2338_v57, %v2338_v57 }
 0x255   :  { %3410 = vmatpush3.bf16.msra.mxu1 %v4554_v54  ;;  %v2413_v54 = vshll.u32 %v3641_v19, 16 }
 0x256   :  { %3392 = vmatpush3.bf16.msra.mxu0 %v4985_v9  ;;  %3411 = vmatprep.subr.bf16.mxu1 %v4986_v13  ;;  %v5007_v9 = vld [vmem:[#allocation13_spill] sm:$0xff]  ;;  %v5008_v13 = vld [vmem:[#allocation14_spill] sm:$0xff] }
 0x257   :  { %3393 = vmatprep.subr.bf16.mxu0 %v4572_v35  ;;  %v2893_v35 = vcombine.high %v4858_v36, %v4858_v36 }
 0x259   :  { %3412 = vmatpush3.bf16.msra.mxu1 %v4987_v15  ;;  %v5009_v15 = vld [vmem:[#allocation15_spill] sm:$0xff] }
 0x25a   :  { %3394 = vmatpush3.bf16.msra.mxu0 %v4988_v29  ;;  %3413 = vmatprep.subr.bf16.mxu1 %v4989_v30  ;;  %v2365_v29 = vshll.u32 %v2888_v55, 16  ;;  %v2415_v30 = vrot.slane %v2413_v54, 1 }
 0x25b   :  { %3395 = vmatprep.subr.bf16.mxu0 %v4691_v32  ;;  %v2418_v32 = vshll.u32 %v2893_v35, 16 }
 0x25c   :  { %v2367_v11 = vrot.slane %v2365_v29, 1  ;;  %v2416_v57 = vor.u32 %v2415_v30, %v2411_v27 }
 0x25d   :  { %3414 = vmatpush3.bf16.msra.mxu1 %v4990_v41  ;;  %v5010_v41 = vld [vmem:[#allocation16_spill] sm:$0xff]  ;;  %v2420_v3 = vrot.slane %v2418_v32, 1 }
 0x25e   :  { %3396 = vmatpush3.bf16.msra.mxu0 %v4698_v16  ;;  %3415 = vmatprep.subr.bf16.mxu1 %v5001_v34  ;;  %v5011_v16 = vld [vmem:[#allocation5_spill] sm:$0xff] }
 0x25f   :  { %3397 = vmatprep.subr.bf16.mxu0 %v5002_v1 }
 0x261   :  { %3416 = vmatpush3.bf16.msra.mxu1 %v5003_v42 }
 0x262   :  { %3398 = vmatpush3.bf16.msra.mxu0 %v5004_v59  ;;  %3417 = vmatprep.subr.bf16.mxu1 %v5005_v46 }
 0x263   :  { %3399 = vmatprep.subr.bf16.mxu0 %v5006_v49 }
 0x265   :  { %3418 = vmatpush3.bf16.msra.mxu1 %v5007_v9 }
 0x266   :  { %3400 = vmatpush3.bf16.msra.mxu0 %v5008_v13  ;;  %3419 = vmatprep.subr.bf16.mxu1 %v5009_v15 }
 0x267   :  { %3429 = vmatprep.subr.bf16.mxu0 %v4767_v61  ;;  %v3686_v61 = vld [vmem:[%s4948_s3 + $0x1c0] sm:$0xff]  }
 0x269   :  { %2457 = vmatmul.mubr.bf16.vlgmr.msra.gmra.mrb[64].mxu0 %v4814_v23  ;;  %3420 = vmatpush3.bf16.msra.mxu1 %v5010_v41  ;;  %v2368_v23 = vsel %vm1190_vm2, %v2145_v39, %v2367_v11 }
 0x26a   :  { %3430 = vmatpush3.bf16.msra.mxu0 %v5011_v16  ;;  %2538 = vmatprep.mubr.bf16.mxu0 %v3641_v19 }
 0x26b   :  { %3421 = vmatprep.subr.bf16.mxu1 %v4783_v62  ;;  %3431 = vmatprep.subr.bf16.mxu0 %v4277_v10  ;;  %v2421_v62 = vsel %vm1190_vm2, %v2416_v57, %v2420_v3 }
 0x26d   :  { %3422 = vmatpush3.bf16.msra.mxu1 %v4790_v2 }
 0x26e   :  { %3432 = vmatpush3.bf16.msra.mxu0 %v4285_v14  ;;  %3451 = vmatprep.subr.bf16.mxu1 %v3686_v61 }
 0x26f   :  { %3433 = vmatprep.subr.bf16.mxu0 %v4293_v26 }
 0x270   :  { %2498 = vmatmul.mubr.bf16.vlgmr.msra.gmra.mrb[64].mxu1 %v2368_v23 }
 0x271   :  { %3452 = vmatpush3.bf16.msra.mxu1 %v4298_v38  ;;  %2579 = vmatprep.mubr.bf16.mxu1 %v2421_v62  ;;  %v3639_v38 = vld [vmem:[#allocation2 + $0x60] ss:$8 sps:$4 sm:$0xff]  }
 0x272   :  { %3434 = vmatpush3.bf16.msra.mxu0 %v4303_v33  ;;  %3453 = vmatprep.subr.bf16.mxu1 %v4313_v22 }
 0x273   :  { %3435 = vmatprep.subr.bf16.mxu0 %v4321_v45  ;;  %v4902_v45 = vld [vmem:[%s4949_s4] ss:$0 sm:$0xff] }
 0x275   :  { %3454 = vmatpush3.bf16.msra.mxu1 %v4329_v43  ;;  %v2892_v43 = vcombine.low %v4858_v36, %v4858_v36 }
 0x276   :  { %3436 = vmatpush3.bf16.msra.mxu0 %v4336_v58  ;;  %3455 = vmatprep.subr.bf16.mxu1 %v4341_v47  ;;  %v2401_v47 = vshll.u32 %v3639_v38, 16 }
 0x277   :  { %3437 = vmatprep.subr.bf16.mxu0 %v4350_v37 }
 0x279   :  { %3456 = vmatpush3.bf16.msra.mxu1 %v4358_v56 }
 0x27a   :  { %3438 = vmatpush3.bf16.msra.mxu0 %v4367_v4  ;;  %3457 = vmatprep.subr.bf16.mxu1 %v4372_v5 }
 0x27b   :  { %3439 = vmatprep.subr.bf16.mxu0 %v4380_v6 }
 0x27c   :  { %v3137_v2 = vpop.f32.mrb[40].mxu0 }
 0x27d   :  { %3458 = vmatpush3.bf16.msra.mxu1 %v4386_v7  ;;  %v3138_v10 = vpop.f32.mrb[41].mxu0  ;;  %v5012_v7 = vld [vmem:[#allocation6_spill] sm:$0xff] }
 0x27e   :  { %v3139_v14 = vadd.f32 %v3138_v10, %v3137_v2  ;;  %3440 = vmatpush3.bf16.msra.mxu0 %v4393_v12  ;;  %v3140_v26 = vpop.f32.mrb[42].mxu0  ;;  %3459 = vmatprep.subr.bf16.mxu1 %v4398_v50  ;;  %v2406_v12 = vshll.u32 %v2892_v43, 16 }
 0x27f   :  { %v3141_v33 = vpop.f32.mrb[43].mxu0  ;;  %3441 = vmatprep.subr.bf16.mxu0 %v4406_v0 }
 0x280   :  { %v3142_v22 = vadd.f32 %v3141_v33, %v3140_v26  ;;  %v1683_v56 = vadd.f32 %v3139_v14, %v4902_v45  ;;  %v2408_v63 = vrot.slane %v2406_v12, 1  ;;  %v2894_v12 = vld [vmem:[%s4950_s5 + $0x8] sm:$0xff] }
 0x281   :  { %3460 = vmatpush3.bf16.msra.mxu1 %v4412_v18 }
 0x282   :  { %3442 = vmatpush3.bf16.msra.mxu0 %v4419_v20  ;;  %3461 = vmatprep.subr.bf16.mxu1 %v4424_v21  ;;  %v1686_v50 = vadd.f32 %v3142_v22, %v4902_v45  ;;  %v2403_v20 = vrot.slane %v2401_v47, 1 }
 0x283   :  { %v3159_v58 = vpop.f32.mrb[40].mxu1  ;;  %3443 = vmatprep.subr.bf16.mxu0 %v4433_v24  ;;  %v2399_v24 = vshrl.u32 %v3639_v38, 16 }
 0x284   :  { %v3160_v37 = vpop.f32.mrb[41].mxu1 }
 0x285   :  { %v3161_v4 = vadd.f32 %v3160_v37, %v3159_v58  ;;  %3462 = vmatpush3.bf16.msra.mxu1 %v4439_v25  ;;  %v3162_v5 = vpop.f32.mrb[42].mxu1  ;;  %v2404_v25 = vor.u32 %v2403_v20, %v2399_v24 }
 0x286   :  { %3444 = vmatpush3.bf16.msra.mxu0 %v4448_v31  ;;  %v3163_v6 = vpop.f32.mrb[43].mxu1  ;;  %3463 = vmatprep.subr.bf16.mxu1 %v5012_v7  ;;  %v2597_v7 = vld [vmem:[%s4950_s5] sm:$0xff] }
 0x287   :  { %v1724_v0 = vadd.f32 %v3161_v4, %v1683_v56  ;;  %v3164_v18 = vadd.f32 %v3163_v6, %v3162_v5  ;;  %v2409_v31 = vsel %vm1190_vm2, %v2404_v25, %v2408_v63 }
 0x289   :  { %v1727_v21 = vadd.f32 %v3164_v18, %v1686_v50  ;;  %2539 = vmatmul.mubr.bf16.vlgmr.msra.gmra.mrb[68].mxu0 %v3639_v38  ;;  %3464 = vmatpush3.bf16.msra.mxu1 %v4465_v44 }
 0x28a   :  { %3465 = vmatprep.subr.bf16.mxu1 %v4478_v48 }
 0x28d   :  { %3466 = vmatpush3.bf16.msra.mxu1 %v4485_v53 }
 0x290   :  { %2580 = vmatmul.mubr.bf16.vlgmr.msra.gmra.mrb[68].mxu1 %v2409_v31 }
 0x29c   :  { %v3181_v52 = vpop.f32.mrb[44].mxu0 }
 0x29d   :  { %v3182_v51 = vpop.f32.mrb[45].mxu0 }
 0x29e   :  { %v3183_v8 = vadd.f32 %v3182_v51, %v3181_v52  ;;  %v3184_v40 = vpop.f32.mrb[46].mxu0  ;;  %v12_v51 = vstv %s4951_s6 }
 0x29f   :  { %v3185_v39 = vpop.f32.mrb[47].mxu0  ;;  %13 = vst [vmem:[#allocation4] sm:$0x1] %v12_v51 }
 0x2a0   :  { %v1765_v28 = vadd.f32 %v3183_v8, %v1724_v0  ;;  %v3186_v17 = vadd.f32 %v3185_v39, %v3184_v40 }
 0x2a2   :  { %v1768_v60 = vadd.f32 %v3186_v17, %v1727_v21 }
 0x2a3   :  { %v3203_v34 = vpop.f32.mrb[44].mxu1 }
 0x2a4   :  { %v3204_v44 = vpop.f32.mrb[45].mxu1 }
 0x2a5   :  { %v3205_v1 = vadd.f32 %v3204_v44, %v3203_v34  ;;  %v3206_v19 = vpop.f32.mrb[46].mxu1 }
 0x2a6   :  { %v3207_v48 = vpop.f32.mrb[47].mxu1 }
 0x2a7   :  { %v1806_v42 = vadd.f32 %v3205_v1, %v1765_v28  ;;  %v3208_v36 = vadd.f32 %v3207_v48, %v3206_v19 }
 0x2a9   :  { %v1809_v59 = vadd.f32 %v3208_v36, %v1768_v60  ;;  %v1812_v33 = vmul.f32 0.2, %v1806_v42 }
 0x2ab   :  { %v1813_v47 = vmul.f32 0.2, %v1809_v59  ;;  %v1814_v4 = vmax.f32 %v1806_v42, %v1812_v33 }
 0x2ad   :  { %v1815_v50 = vmax.f32 %v1809_v59, %v1813_v47  ;;  %v2598_v20 = vmul.f32 %v2597_v7, %v1814_v4 }
 0x2af   :  { %v2599_v25 = vmul.f32 %v2597_v7, %v1815_v50 }
 0x2bc   :  { %v3225_v53 = vpop.f32.mrb[48].mxu0 }
 0x2bd   :  { %v3226_v46 = vpop.f32.mrb[49].mxu0 }
 0x2be   :  { %v3227_v49 = vadd.f32 %v3226_v46, %v3225_v53  ;;  %v3228_v55 = vpop.f32.mrb[50].mxu0 }
 0x2bf   :  { %v3229_v54 = vpop.f32.mrb[51].mxu0 }
 0x2c0   :  { %v3230_v35 = vadd.f32 %v3229_v54, %v3228_v55  ;;  %v1941_v15 = vadd.f32 %v3227_v49, %v4902_v45 }
 0x2c2   :  { %v1944_v41 = vadd.f32 %v3230_v35, %v4902_v45 }
 0x2c3   :  { %v3247_v9 = vpop.f32.mrb[48].mxu1 }
 0x2c4   :  { %v3248_v13 = vpop.f32.mrb[49].mxu1 }
 0x2c5   :  { %v3249_v29 = vadd.f32 %v3248_v13, %v3247_v9  ;;  %v3250_v30 = vpop.f32.mrb[50].mxu1 }
 0x2c6   :  { %v3251_v32 = vpop.f32.mrb[51].mxu1 }
 0x2c7   :  { %v1982_v16 = vadd.f32 %v3249_v29, %v1941_v15  ;;  %v3252_v27 = vadd.f32 %v3251_v32, %v3250_v30 }
 0x2c9   :  { %v1985_v11 = vadd.f32 %v3252_v27, %v1944_v41 }
 0x2dc   :  { %v3269_v57 = vpop.f32.mrb[52].mxu0 }
 0x2dd   :  { %v3270_v3 = vpop.f32.mrb[53].mxu0 }
 0x2de   :  { %v3271_v61 = vadd.f32 %v3270_v3, %v3269_v57  ;;  %v3272_v23 = vpop.f32.mrb[54].mxu0 }
 0x2df   :  { %v3273_v62 = vpop.f32.mrb[55].mxu0 }
 0x2e0   :  { %v2023_v2 = vadd.f32 %v3271_v61, %v1982_v16  ;;  %v3274_v10 = vadd.f32 %v3273_v62, %v3272_v23  ;;  %v2895_v23 = vld [vmem:[%s4950_s5 + $0x10] sm:$0xff] }
 0x2e2   :  { %v2026_v14 = vadd.f32 %v3274_v10, %v1985_v11 }
 0x2e3   :  { %v3291_v26 = vpop.f32.mrb[52].mxu1 }
 0x2e4   :  { %v3292_v38 = vpop.f32.mrb[53].mxu1 }
 0x2e5   :  { %v3293_v22 = vadd.f32 %v3292_v38, %v3291_v26  ;;  %v3294_v43 = vpop.f32.mrb[54].mxu1 }
 0x2e6   :  { %v3295_v58 = vpop.f32.mrb[55].mxu1 }
 0x2e7   :  { %v2064_v37 = vadd.f32 %v3293_v22, %v2023_v2  ;;  %v3296_v56 = vadd.f32 %v3295_v58, %v3294_v43 }
 0x2e9   :  { %v2070_v5 = vmul.f32 0.2, %v2064_v37  ;;  %v2067_v6 = vadd.f32 %v3296_v56, %v2026_v14 }
 0x2eb   :  { %v2072_v0 = vmax.f32 %v2064_v37, %v2070_v5  ;;  %v2071_v18 = vmul.f32 0.2, %v2067_v6 }
 0x2ed   :  { %v2604_v21 = vmul.f32 %v2894_v12, %v2072_v0  ;;  %v2073_v24 = vmax.f32 %v2067_v6, %v2071_v18 }
 0x2ef   :  { %v2605_v63 = vmul.f32 %v2894_v12, %v2073_v24  ;;  %v2606_v31 = vadd.f32 %v2604_v21, %v2598_v20 }
 0x2f1   :  { %v2607_v52 = vadd.f32 %v2605_v63, %v2599_v25 }
 0x2fc   :  { %v3313_v8 = vpop.f32.mrb[56].mxu0 }
 0x2fd   :  { %v3314_v40 = vpop.f32.mrb[57].mxu0 }
 0x2fe   :  { %v3315_v39 = vadd.f32 %v3314_v40, %v3313_v8  ;;  %v3316_v28 = vpop.f32.mrb[58].mxu0 }
 0x2ff   :  { %v3317_v17 = vpop.f32.mrb[59].mxu0 }
 0x300   :  { %v3318_v60 = vadd.f32 %v3317_v17, %v3316_v28  ;;  %v2200_v1 = vadd.f32 %v3315_v39, %v4902_v45 }
 0x302   :  { %v2203_v36 = vadd.f32 %v3318_v60, %v4902_v45 }
 0x303   :  { %v3335_v34 = vpop.f32.mrb[56].mxu1 }
 0x304   :  { %v3336_v44 = vpop.f32.mrb[57].mxu1 }
 0x305   :  { %v3337_v19 = vadd.f32 %v3336_v44, %v3335_v34  ;;  %v3338_v48 = vpop.f32.mrb[58].mxu1 }
 0x306   :  { %v3339_v42 = vpop.f32.mrb[59].mxu1 }
 0x307   :  { %v2241_v59 = vadd.f32 %v3337_v19, %v2200_v1  ;;  %v3340_v53 = vadd.f32 %v3339_v42, %v3338_v48  ;;  %v2896_v48 = vld [vmem:[%s4950_s5 + $0x18] sm:$0xff] }
 0x309   :  { %v2244_v46 = vadd.f32 %v3340_v53, %v2203_v36 }
 0x31c   :  { %v3357_v49 = vpop.f32.mrb[60].mxu0 }
 0x31d   :  { %v3358_v55 = vpop.f32.mrb[61].mxu0 }
 0x31e   :  { %v3359_v54 = vadd.f32 %v3358_v55, %v3357_v49  ;;  %v3360_v35 = vpop.f32.mrb[62].mxu0 }
 0x31f   :  { %v3361_v9 = vpop.f32.mrb[63].mxu0 }
 0x320   :  { %v2282_v13 = vadd.f32 %v3359_v54, %v2241_v59  ;;  %v3362_v15 = vadd.f32 %v3361_v9, %v3360_v35 }
 0x322   :  { %v2285_v29 = vadd.f32 %v3362_v15, %v2244_v46 }
 0x323   :  { %v3379_v30 = vpop.f32.mrb[60].mxu1 }
 0x324   :  { %v3380_v32 = vpop.f32.mrb[61].mxu1 }
 0x325   :  { %v3381_v41 = vadd.f32 %v3380_v32, %v3379_v30  ;;  %v3382_v16 = vpop.f32.mrb[62].mxu1 }
 0x326   :  { %v3383_v27 = vpop.f32.mrb[63].mxu1 }
 0x327   :  { %v2323_v11 = vadd.f32 %v3381_v41, %v2282_v13  ;;  %v3384_v57 = vadd.f32 %v3383_v27, %v3382_v16 }
 0x329   :  { %v2329_v3 = vmul.f32 0.2, %v2323_v11  ;;  %v2326_v61 = vadd.f32 %v3384_v57, %v2285_v29 }
 0x32b   :  { %v2331_v62 = vmax.f32 %v2323_v11, %v2329_v3  ;;  %v2330_v2 = vmul.f32 0.2, %v2326_v61  ;;  %v2640_v11 = vld [vmem:[#allocation4] sm:$0x1] }
 0x32d   :  { %v2332_v10 = vmax.f32 %v2326_v61, %v2330_v2  ;;  %v2612_v14 = vmul.f32 %v2895_v23, %v2331_v62 }
 0x32f   :  { %v2614_v26 = vadd.f32 %v2612_v14, %v2606_v31  ;;  %v2613_v38 = vmul.f32 %v2895_v23, %v2332_v10 }
 0x331   :  { %v2615_v33 = vadd.f32 %v2613_v38, %v2607_v52 }
 0x33c   :  { %v3401_v22 = vpop.f32.mrb[64].mxu0 }
 0x33d   :  { %v3402_v43 = vpop.f32.mrb[65].mxu0 }
 0x33e   :  { %v3403_v58 = vadd.f32 %v3402_v43, %v3401_v22  ;;  %v3404_v47 = vpop.f32.mrb[66].mxu0 }
 0x33f   :  { %v3405_v37 = vpop.f32.mrb[67].mxu0 }
 0x340   :  { %v3406_v56 = vadd.f32 %v3405_v37, %v3404_v47  ;;  %v2459_v6 = vadd.f32 %v3403_v58, %v4902_v45 }
 0x342   :  { %v2462_v0 = vadd.f32 %v3406_v56, %v4902_v45 }
 0x343   :  { %v3423_v4 = vpop.f32.mrb[64].mxu1 }
 0x344   :  { %v3424_v5 = vpop.f32.mrb[65].mxu1 }
 0x345   :  { %v3425_v7 = vadd.f32 %v3424_v5, %v3423_v4  ;;  %v3426_v12 = vpop.f32.mrb[66].mxu1 }
 0x346   :  { %v3427_v50 = vpop.f32.mrb[67].mxu1 }
 0x347   :  { %v2500_v18 = vadd.f32 %v3425_v7, %v2459_v6  ;;  %v3428_v20 = vadd.f32 %v3427_v50, %v3426_v12 }
 0x349   :  { %v2503_v21 = vadd.f32 %v3428_v20, %v2462_v0 }
 0x35c   :  { %v3445_v24 = vpop.f32.mrb[68].mxu0 }
 0x35d   :  { %v3446_v25 = vpop.f32.mrb[69].mxu0 }
 0x35e   :  { %v3447_v63 = vadd.f32 %v3446_v25, %v3445_v24  ;;  %v3448_v31 = vpop.f32.mrb[70].mxu0 }
 0x35f   :  { %v3449_v52 = vpop.f32.mrb[71].mxu0 }
 0x360   :  { %v2541_v51 = vadd.f32 %v3447_v63, %v2500_v18  ;;  %v3450_v8 = vadd.f32 %v3449_v52, %v3448_v31 }
 0x362   :  { %v2544_v40 = vadd.f32 %v3450_v8, %v2503_v21 }
 0x363   :  { %v3467_v39 = vpop.f32.mrb[68].mxu1 }
 0x364   :  { %v3468_v28 = vpop.f32.mrb[69].mxu1 }
 0x365   :  { %v3469_v17 = vadd.f32 %v3468_v28, %v3467_v39  ;;  %v3470_v60 = vpop.f32.mrb[70].mxu1 }
 0x366   :  { %v3471_v34 = vpop.f32.mrb[71].mxu1 }
 0x367   :  { %v2582_v44 = vadd.f32 %v3469_v17, %v2541_v51  ;;  %v3472_v1 = vadd.f32 %v3471_v34, %v3470_v60 }
 0x369   :  { %v2588_v19 = vmul.f32 0.2, %v2582_v44  ;;  %v2585_v45 = vadd.f32 %v3472_v1, %v2544_v40 }
 0x36b   :  { %v2590_v42 = vmax.f32 %v2582_v44, %v2588_v19  ;;  %v2589_v36 = vmul.f32 0.2, %v2585_v45 }
 0x36d   :  { %v2591_v59 = vmax.f32 %v2585_v45, %v2589_v36  ;;  %v2620_v53 = vmul.f32 %v2896_v48, %v2590_v42 }
 0x36f   :  { %v2622_v46 = vadd.f32 %v2620_v53, %v2614_v26  ;;  %v2621_v49 = vmul.f32 %v2896_v48, %v2591_v59 }
 0x371   :  { %2624 = vadd.xlane.f32.xlu0 %v2622_v46  ;;  %v2623_v55 = vadd.f32 %v2621_v49, %v2615_v33 }
 0x373   :  { %2626 = vadd.xlane.f32.xlu1 %v2623_v55 }
 0x3fe   :  { %v2625_v54 = vpop.xlane.xlu0 %2624 }
 0x3ff   :  { %v2628_v35 = vrot.slane %v2625_v54, 4 }
 0x400   :  { %v2627_v9 = vpop.xlane.xlu1 %2626 }
 0x401   :  { %v2629_v13 = vadd.f32 %v2628_v35, %v2625_v54  ;;  %v2634_v15 = vrot.slane %v2627_v9, 4 }
 0x403   :  { %v2630_v29 = vrot.slane %v2629_v13, 2  ;;  %v2635_v30 = vadd.f32 %v2634_v15, %v2627_v9 }
 0x405   :  { %v2631_v32 = vadd.f32 %v2630_v29, %v2629_v13  ;;  %v2636_v41 = vrot.slane %v2635_v30, 2 }
 0x407   :  { %v2632_v16 = vrot.slane %v2631_v32, 1  ;;  %v2637_v27 = vadd.f32 %v2636_v41, %v2635_v30 }
 0x409   :  { %v2633_v57 = vadd.f32 %v2632_v16, %v2631_v32  ;;  %v2638_v3 = vrot.slane %v2637_v27, 1 }
 0x40b   :  { %v2641_v61 = vadd.f32 %v2640_v11, %v2633_v57  ;;  %v2639_v23 = vadd.f32 %v2638_v3, %v2637_v27 }
 0x40d   :  { %v2643_v62 = vand.u32 2147483647, %v2641_v61  ;;  %v2642_v2 = vadd.f32 %v2640_v11, %v2639_v23  ;;  %vm2651_vm4 = vcmp.ge.f32.partialorder %v2641_v61, 0.0 }
 0x40f   :  { %v2645_v10 = vsub.f32 0.0, %v2643_v62  ;;  %v2644_v14 = vand.u32 2147483647, %v2642_v2  ;;  %vm2652_vm5 = vcmp.ge.f32.partialorder %v2642_v2, 0.0 }
 0x411   :  { %v2647_v26 = vmul.f32 1.442695, %v2645_v10  ;;  %v2646_v38 = vsub.f32 0.0, %v2644_v14 }
 0x413   :  { %3645 = vpow2.f32 %v2647_v26  ;;  %v2649_v33 = vmul.f32 1.442695, %v2646_v38 }
 0x415   :  { %3647 = vpow2.f32 %v2649_v33 }
 0x41d   :  { %v3646_v22 = vpop.eup %3645 }
 0x41e   :  { %v2653_v43 = vadd.f32 1.0, %v3646_v22 }
 0x41f   :  { %v3648_v58 = vpop.eup %3647 }
 0x420   :  { %3649 = vrcp.f32 %v2653_v43  ;;  %v2654_v47 = vadd.f32 1.0, %v3648_v58 }
 0x422   :  { %3651 = vrcp.f32 %v2654_v47 }
 0x42a   :  { %v3650_v37 = vpop.eup %3649 }
 0x42b   :  { %v2659_v56 = vmul.f32 %v3650_v37, %v3646_v22 }
 0x42c   :  { %v3652_v4 = vpop.eup %3651 }
 0x42d   :  { %v2661_v5 = vsel %vm2651_vm4, %v3650_v37, %v2659_v56  ;;  %v2660_v6 = vmul.f32 %v3652_v4, %v3648_v58 }
 0x42e   :  { %2664 = vst.msk [vmem:[%s4952_s7] sm:$0x1] %vm2663_vm3, %v2661_v5 }
 0x42f   :  { %v2662_v7 = vsel %vm2652_vm5, %v3652_v4, %v2660_v6 }
 0x430   :  { %2665 = vst.msk [vmem:[%s4952_s7 + $0x1] sm:$0x1] %vm2663_vm3, %v2662_v7 }

</bundles_post_ra>
